<compile_context>
chip_gen: v7x
topology: tpu7x:2x2x1
jax: 0.10.0
libtpu: 0.0.40
codegen_flags: <defaults>
</compile_context>

<pallas_src>
import functools
import math

import jax
import jax.numpy as jnp
from jax.experimental import pallas as pl
from jax.experimental.pallas import tpu as pltpu


def _round_up(x, m):
    return ((x + m - 1) // m) * m


def _vmem_capacity_bytes():
    try:
        return int(pltpu.get_tpu_info().vmem_capacity_bytes)
    except Exception:
        return 64 * 2**20  # conservative default (v7x per-TensorCore physical VMEM)


# --------------------------------------------------------------------------------------
# Fused im2col + matmul kernel (stride == 1)
# --------------------------------------------------------------------------------------
def _fused_conv_kernel(x_ref, w_ref, o_ref, *, KH, KW, OW, tile_oh):
    """One (batch image, output-row tile) grid point.

    x_ref: (1, Hp, Wp, C)  padded NHWC image (resident across the row-tile axis)
    w_ref: (KH*KW, C, O)   pre-masked weights (resident for the whole grid)
    o_ref: (1, tile_oh, OW, O)
    """
    C = x_ref.shape[3]
    O = w_ref.shape[2]
    row0 = pl.program_id(1) * tile_oh
    acc = jnp.zeros((tile_oh * OW, O), jnp.float32)
    for kh in range(KH):
        rows = x_ref[0, pl.ds(row0 + kh, tile_oh), :, :]              # (tile_oh, Wp, C)
        for kw in range(KW):
            win = rows[:, kw:kw + OW, :].reshape(tile_oh * OW, C)     # (tile_oh*OW, C)
            acc = acc + jnp.dot(win, w_ref[kh * KW + kw],
                                preferred_element_type=jnp.float32)
    o_ref[...] = acc.reshape(1, tile_oh, OW, O).astype(o_ref.dtype)


def _pick_tile_oh(*, N, OH, OW, C, O, Hp, Wp, KH, KW, in_it, out_it, vmem_cap):
    """Largest divisor of OH whose VMEM footprint fits the budget; prefer >= 2 grid steps."""
    def footprint(t):
        # Lane dim rounded to 128, sublane-ish dims to 8: approximates real VMEM tiling.
        img = Hp * _round_up(Wp, 8) * _round_up(C, 128) * in_it            # per buffer
        w = KH * KW * _round_up(C, 8) * _round_up(O, 128) * in_it          # per buffer
        out_t = t * _round_up(OW, 8) * _round_up(O, 128) * out_it          # per buffer
        acc = _round_up(t * OW, 8) * _round_up(O, 128) * 4                 # f32 accumulator
        return 2 * img + 2 * w + 2 * out_t + acc

    budget = int(0.45 * vmem_cap)
    best = None
    for t in sorted((d for d in range(1, OH + 1) if OH % d == 0), reverse=True):
        if footprint(t) <= budget:
            if best is None:
                best = t                    # largest tile that fits this generation's VMEM
            if N * (OH // t) >= 2:          # keep both v7x TensorCores busy
                best = t
                break
    if best is None:
        best = 1
    return best, footprint(best)


def _masked_conv2d_fused_s1(x, weights, mask, padding, compute_dtype, out_format):
    N, C, H, W = x.shape
    O, _, KH, KW = weights.shape
    Hp, Wp = H + 2 * padding, W + 2 * padding
    OH, OW = Hp - KH + 1, Wp - KW + 1
    out_dtype = x.dtype

    # Cast to the compute dtype BEFORE the layout/pad pass (halves its HBM bytes for bf16).
    x_nhwc = jnp.transpose(x, (0, 2, 3, 1)).astype(compute_dtype)
    x_nhwc = jnp.pad(x_nhwc, ((0, 0), (padding, padding), (padding, padding), (0, 0)))

    # Pre-masked weights, laid out (KH*KW, C, O): grid-invariant, computed once.
    w3 = (weights * mask[None, None, :, :]).astype(compute_dtype)
    w3 = jnp.transpose(w3, (2, 3, 1, 0)).reshape(KH * KW, C, O)

    vmem_cap = _vmem_capacity_bytes()
    tile_oh, footprint = _pick_tile_oh(
        N=N, OH=OH, OW=OW, C=C, O=O, Hp=Hp, Wp=Wp, KH=KH, KW=KW,
        in_it=jnp.dtype(compute_dtype).itemsize,
        out_it=jnp.dtype(out_dtype).itemsize, vmem_cap=vmem_cap)
    num_tiles = OH // tile_oh
    vmem_limit = int(min(0.8 * vmem_cap, max(footprint + (8 << 20), 32 << 20)))

    kernel = functools.partial(_fused_conv_kernel, KH=KH, KW=KW, OW=OW, tile_oh=tile_oh)

    out_nhwc = pl.pallas_call(
        kernel,
        out_shape=jax.ShapeDtypeStruct((N, OH, OW, O), out_dtype),
        grid=(N, num_tiles),
        in_specs=[
            # Whole padded image; constant index along the row-tile axis -> fetched once per
            # batch element and kept resident in VMEM.
            pl.BlockSpec((1, Hp, Wp, C), lambda n, j: (n, 0, 0, 0)),
            # Pre-masked weights; constant index -> fetched once for the whole grid.
            pl.BlockSpec((KH * KW, C, O), lambda n, j: (0, 0, 0)),
        ],
        out_specs=pl.BlockSpec((1, tile_oh, OW, O), lambda n, j: (n, j, 0, 0)),
        compiler_params=pltpu.CompilerParams(
            dimension_semantics=("parallel", "parallel"),
            vmem_limit_bytes=vmem_limit,
        ),
    )(x_nhwc, w3)

    if out_format == "NHWC":
        return out_nhwc
    return jnp.transpose(out_nhwc, (0, 3, 1, 2))   # module contract is NCHW


# --------------------------------------------------------------------------------------
# Fallback: wrapper-side im2col + matmul kernel (stride > 1)
# --------------------------------------------------------------------------------------
def _matmul_kernel(p_ref, w_ref, o_ref):
    o_ref[...] = jnp.dot(p_ref[...], w_ref[...],
                         preferred_element_type=jnp.float32).astype(o_ref.dtype)


def _masked_conv2d_im2col(x, weights, mask, stride, padding, compute_dtype, out_format):
    # TODO(synk): fuse this strided im2col into the kernel too (strided pl.ds windows).
    N, C, H, W = x.shape
    O, _, KH, KW = weights.shape
    Hp, Wp = H + 2 * padding, W + 2 * padding
    OH = (Hp - KH) // stride + 1
    OW = (Wp - KW) // stride + 1
    K = C * KH * KW
    M = N * OH * OW
    out_dtype = x.dtype

    x_nhwc = jnp.transpose(x, (0, 2, 3, 1)).astype(compute_dtype)   # cast before im2col
    x_nhwc = jnp.pad(x_nhwc, ((0, 0), (padding, padding), (padding, padding), (0, 0)))
    slices = [x_nhwc[:, kh:kh + stride * OH:stride, kw:kw + stride * OW:stride, :]
              for kh in range(KH) for kw in range(KW)]
    patches = jnp.stack(slices, axis=3).reshape(M, K)               # feature order (kh, kw, c)

    w2 = (weights * mask[None, None, :, :]).astype(compute_dtype)
    w2 = jnp.transpose(w2, (2, 3, 1, 0)).reshape(K, O)

    vmem_cap = _vmem_capacity_bytes()
    in_it = jnp.dtype(compute_dtype).itemsize
    out_it = jnp.dtype(out_dtype).itemsize
    budget = int(0.45 * vmem_cap)
    w_bytes = 2 * _round_up(K, 8) * _round_up(O, 128) * in_it
    tile_m = 8
    for cand in (4096, 2048, 1024, 512, 256, 128, 64, 32, 16, 8):
        need = (w_bytes + 2 * cand * _round_up(K, 128) * in_it
                + 2 * cand * _round_up(O, 128) * out_it)
        if need <= budget:
            tile_m = cand
            break
    tile_m = min(tile_m, _round_up(M, 8))
    Mp = _round_up(M, tile_m)
    patches = jnp.pad(patches, ((0, Mp - M), (0, 0)))
    footprint = (w_bytes + 2 * tile_m * _round_up(K, 128) * in_it
                 + 2 * tile_m * _round_up(O, 128) * out_it)
    vmem_limit = int(min(0.8 * vmem_cap, max(footprint + (8 << 20), 32 << 20)))

    out = pl.pallas_call(
        _matmul_kernel,
        out_shape=jax.ShapeDtypeStruct((Mp, O), out_dtype),
        grid=(Mp // tile_m,),
        in_specs=[
            pl.BlockSpec((tile_m, K), lambda i: (i, 0)),
            pl.BlockSpec((K, O), lambda i: (0, 0)),      # resident weight block
        ],
        out_specs=pl.BlockSpec((tile_m, O), lambda i: (i, 0)),
        compiler_params=pltpu.CompilerParams(
            dimension_semantics=("parallel",),
            vmem_limit_bytes=vmem_limit,
        ),
    )(patches, w2)

    out = out[:M].reshape(N, OH, OW, O)
    if out_format == "NHWC":
        return out
    return jnp.transpose(out, (0, 3, 1, 2))


# --------------------------------------------------------------------------------------
# Public wrapper + parameter helpers
# --------------------------------------------------------------------------------------
def masked_conv2d(x, weights, mask, *, stride=1, padding=0,
                  compute_dtype=jnp.bfloat16, out_format="NCHW"):
    """== F.conv2d(x, weights * mask, stride=stride, padding=padding); NCHW, no bias.

    compute_dtype=jnp.float32 is the documented numerics-parity path (full-precision
    operands); the bf16 default keeps f32 accumulation but halves HBM traffic.
    out_format="NHWC" returns channels-last and skips the final layout transpose.
    """
    if stride == 1:
        return _masked_conv2d_fused_s1(x, weights, mask, padding, compute_dtype, out_format)
    return _masked_conv2d_im2col(x, weights, mask, stride, padding, compute_dtype, out_format)


def make_mask(kernel_size, mask_type):
    # mask = ones(k*k); mask[floor(k*k/2) if 'A' else ceil(k*k/2):] = 0; reshape(k, k)
    kk = kernel_size * kernel_size
    cut = math.floor(kk / 2) if mask_type == 'A' else math.ceil(kk / 2)
    return (jnp.arange(kk) < cut).astype(jnp.float32).reshape(kernel_size, kernel_size)


def kaiming_uniform(key, shape):
    # torch.nn.init.kaiming_uniform_ defaults (a=0, fan_in mode): bound = sqrt(6 / fan_in)
    fan_in = shape[1] * shape[2] * shape[3]
    bound = math.sqrt(6.0 / fan_in)
    return jax.random.uniform(key, shape, jnp.float32, minval=-bound, maxval=bound)


if __name__ == "__main__":
    in_channels, out_channels, kernel_size = 4, 8, 3
    mask_type = 'B'

    key = jax.random.PRNGKey(0)
    kx, kw = jax.random.split(key)
    x = jax.random.normal(kx, (2, in_channels, 16, 16), jnp.float32)
    weights = kaiming_uniform(kw, (out_channels, in_channels, kernel_size, kernel_size))
    mask = make_mask(kernel_size, mask_type)
    w_masked = weights * mask[None, None]

    def xla_conv(xx, ww, stride, padding):
        return jax.lax.conv_general_dilated(
            xx, ww, (stride, stride), [(padding, padding), (padding, padding)],
            dimension_numbers=('NCHW', 'OIHW', 'NCHW'))

    # Fused (stride=1) path, bf16 compute / f32 accumulate.
    out = masked_conv2d(x, weights, mask, stride=1, padding=1)
    jax.block_until_ready(out)

    ref_f32 = xla_conv(x, w_masked, 1, 1)                         # true module semantics
    assert out.shape == ref_f32.shape
    assert jnp.allclose(out, ref_f32, atol=6e-2, rtol=6e-2)

    ref_bf16 = xla_conv(x.astype(jnp.bfloat16).astype(jnp.float32),
                        w_masked.astype(jnp.bfloat16).astype(jnp.float32), 1, 1)
    assert jnp.allclose(out, ref_bf16, atol=2e-3, rtol=2e-3)      # tight check of the kernel

    # Strided fallback path (stride=2).
    out_s2 = masked_conv2d(x, weights, mask, stride=2, padding=1)
    jax.block_until_ready(out_s2)
    ref_s2 = xla_conv(x.astype(jnp.bfloat16).astype(jnp.float32),
                      w_masked.astype(jnp.bfloat16).astype(jnp.float32), 2, 1)
    assert out_s2.shape == ref_s2.shape
    assert jnp.allclose(out_s2, ref_s2, atol=2e-3, rtol=2e-3)

    print("KERNEL_OK")
</pallas_src>

<mosaic_0001>
module attributes {stable_mosaic.version = 11 : i64} {
  func.func @_fused_conv_kernel(%arg0: i32, %arg1: i32, %arg2: memref<1x18x18x4xbf16, #tpu.memory_space<vmem>>, %arg3: memref<9x4x8xbf16, #tpu.memory_space<vmem>>, %arg4: memref<1x16x16x8xf32, #tpu.memory_space<vmem>>) attributes {dimension_semantics = [#tpu.dimension_semantics<parallel>, #tpu.dimension_semantics<parallel>], iteration_bounds = array<i64: 2, 1>, scalar_prefetch = 0 : i64, scratch_operands = 0 : i64, tpu.core_type = #tpu.core_type<tc>, window_params = [{transform_indices = @transform_0, window_bounds = array<i64: 1, 18, 18, 4>}, {pipeline_mode = #tpu.pipeline_mode<synchronous>, transform_indices = @transform_1, window_bounds = array<i64: 9, 4, 8>}, {transform_indices = @transform_2, window_bounds = array<i64: 1, 16, 16, 8>}]} {
    %c16_i32 = arith.constant 16 : i32
    %0 = arith.muli %arg1, %c16_i32 : i32
    %cst = arith.constant 0.000000e+00 : f32
    %1 = vector.broadcast %cst : f32 to vector<256x8xf32>
    %c0_i32 = arith.constant 0 : i32
    %2 = arith.addi %0, %c0_i32 : i32
    %c0 = arith.constant 0 : index
    %3 = arith.index_cast %2 : i32 to index
    %c0_0 = arith.constant 0 : index
    %c0_1 = arith.constant 0 : index
    %4 = vector.load %arg2[%c0, %3, %c0_0, %c0_1] : memref<1x18x18x4xbf16, #tpu.memory_space<vmem>>, vector<1x16x18x4xbf16>
    %5 = vector.shape_cast %4 : vector<1x16x18x4xbf16> to vector<16x18x4xbf16>
    %6 = vector.extract_strided_slice %5 {offsets = [0, 0, 0], sizes = [16, 16, 4], strides = [1, 1, 1]} : vector<16x18x4xbf16> to vector<16x16x4xbf16>
    %7 = vector.shape_cast %6 : vector<16x16x4xbf16> to vector<256x4xbf16>
    %c0_2 = arith.constant 0 : index
    %c0_3 = arith.constant 0 : index
    %c0_4 = arith.constant 0 : index
    %8 = vector.load %arg3[%c0_2, %c0_3, %c0_4] : memref<9x4x8xbf16, #tpu.memory_space<vmem>>, vector<1x4x8xbf16>
    %9 = vector.shape_cast %8 : vector<1x4x8xbf16> to vector<4x8xbf16>
    %cst_5 = arith.constant dense<0.000000e+00> : vector<256x8xf32>
    %10 = tpu.matmul %7, %9, %cst_5 {dimension_numbers = #tpu.dot_dimension_numbers<[1], [0], [0], [1], [0, 0, 1, 1], [], []>} : vector<256x4xbf16>, vector<4x8xbf16>, vector<256x8xf32> -> vector<256x8xf32>
    %11 = arith.addf %1, %10 : vector<256x8xf32>
    %12 = vector.extract_strided_slice %5 {offsets = [0, 1, 0], sizes = [16, 16, 4], strides = [1, 1, 1]} : vector<16x18x4xbf16> to vector<16x16x4xbf16>
    %13 = vector.shape_cast %12 : vector<16x16x4xbf16> to vector<256x4xbf16>
    %c1 = arith.constant 1 : index
    %c0_6 = arith.constant 0 : index
    %c0_7 = arith.constant 0 : index
    %14 = vector.load %arg3[%c1, %c0_6, %c0_7] : memref<9x4x8xbf16, #tpu.memory_space<vmem>>, vector<1x4x8xbf16>
    %15 = vector.shape_cast %14 : vector<1x4x8xbf16> to vector<4x8xbf16>
    %cst_8 = arith.constant dense<0.000000e+00> : vector<256x8xf32>
    %16 = tpu.matmul %13, %15, %cst_8 {dimension_numbers = #tpu.dot_dimension_numbers<[1], [0], [0], [1], [0, 0, 1, 1], [], []>} : vector<256x4xbf16>, vector<4x8xbf16>, vector<256x8xf32> -> vector<256x8xf32>
    %17 = arith.addf %11, %16 : vector<256x8xf32>
    %18 = vector.extract_strided_slice %5 {offsets = [0, 2, 0], sizes = [16, 16, 4], strides = [1, 1, 1]} : vector<16x18x4xbf16> to vector<16x16x4xbf16>
    %19 = vector.shape_cast %18 : vector<16x16x4xbf16> to vector<256x4xbf16>
    %c2 = arith.constant 2 : index
    %c0_9 = arith.constant 0 : index
    %c0_10 = arith.constant 0 : index
    %20 = vector.load %arg3[%c2, %c0_9, %c0_10] : memref<9x4x8xbf16, #tpu.memory_space<vmem>>, vector<1x4x8xbf16>
    %21 = vector.shape_cast %20 : vector<1x4x8xbf16> to vector<4x8xbf16>
    %cst_11 = arith.constant dense<0.000000e+00> : vector<256x8xf32>
    %22 = tpu.matmul %19, %21, %cst_11 {dimension_numbers = #tpu.dot_dimension_numbers<[1], [0], [0], [1], [0, 0, 1, 1], [], []>} : vector<256x4xbf16>, vector<4x8xbf16>, vector<256x8xf32> -> vector<256x8xf32>
    %23 = arith.addf %17, %22 : vector<256x8xf32>
    %c1_i32 = arith.constant 1 : i32
    %24 = arith.addi %0, %c1_i32 : i32
    %c0_12 = arith.constant 0 : index
    %25 = arith.index_cast %24 : i32 to index
    %c0_13 = arith.constant 0 : index
    %c0_14 = arith.constant 0 : index
    %26 = vector.load %arg2[%c0_12, %25, %c0_13, %c0_14] : memref<1x18x18x4xbf16, #tpu.memory_space<vmem>>, vector<1x16x18x4xbf16>
    %27 = vector.shape_cast %26 : vector<1x16x18x4xbf16> to vector<16x18x4xbf16>
    %28 = vector.extract_strided_slice %27 {offsets = [0, 0, 0], sizes = [16, 16, 4], strides = [1, 1, 1]} : vector<16x18x4xbf16> to vector<16x16x4xbf16>
    %29 = vector.shape_cast %28 : vector<16x16x4xbf16> to vector<256x4xbf16>
    %c3 = arith.constant 3 : index
    %c0_15 = arith.constant 0 : index
    %c0_16 = arith.constant 0 : index
    %30 = vector.load %arg3[%c3, %c0_15, %c0_16] : memref<9x4x8xbf16, #tpu.memory_space<vmem>>, vector<1x4x8xbf16>
    %31 = vector.shape_cast %30 : vector<1x4x8xbf16> to vector<4x8xbf16>
    %cst_17 = arith.constant dense<0.000000e+00> : vector<256x8xf32>
    %32 = tpu.matmul %29, %31, %cst_17 {dimension_numbers = #tpu.dot_dimension_numbers<[1], [0], [0], [1], [0, 0, 1, 1], [], []>} : vector<256x4xbf16>, vector<4x8xbf16>, vector<256x8xf32> -> vector<256x8xf32>
    %33 = arith.addf %23, %32 : vector<256x8xf32>
    %34 = vector.extract_strided_slice %27 {offsets = [0, 1, 0], sizes = [16, 16, 4], strides = [1, 1, 1]} : vector<16x18x4xbf16> to vector<16x16x4xbf16>
    %35 = vector.shape_cast %34 : vector<16x16x4xbf16> to vector<256x4xbf16>
    %c4 = arith.constant 4 : index
    %c0_18 = arith.constant 0 : index
    %c0_19 = arith.constant 0 : index
    %36 = vector.load %arg3[%c4, %c0_18, %c0_19] : memref<9x4x8xbf16, #tpu.memory_space<vmem>>, vector<1x4x8xbf16>
    %37 = vector.shape_cast %36 : vector<1x4x8xbf16> to vector<4x8xbf16>
    %cst_20 = arith.constant dense<0.000000e+00> : vector<256x8xf32>
    %38 = tpu.matmul %35, %37, %cst_20 {dimension_numbers = #tpu.dot_dimension_numbers<[1], [0], [0], [1], [0, 0, 1, 1], [], []>} : vector<256x4xbf16>, vector<4x8xbf16>, vector<256x8xf32> -> vector<256x8xf32>
    %39 = arith.addf %33, %38 : vector<256x8xf32>
    %40 = vector.extract_strided_slice %27 {offsets = [0, 2, 0], sizes = [16, 16, 4], strides = [1, 1, 1]} : vector<16x18x4xbf16> to vector<16x16x4xbf16>
    %41 = vector.shape_cast %40 : vector<16x16x4xbf16> to vector<256x4xbf16>
    %c5 = arith.constant 5 : index
    %c0_21 = arith.constant 0 : index
    %c0_22 = arith.constant 0 : index
    %42 = vector.load %arg3[%c5, %c0_21, %c0_22] : memref<9x4x8xbf16, #tpu.memory_space<vmem>>, vector<1x4x8xbf16>
    %43 = vector.shape_cast %42 : vector<1x4x8xbf16> to vector<4x8xbf16>
    %cst_23 = arith.constant dense<0.000000e+00> : vector<256x8xf32>
    %44 = tpu.matmul %41, %43, %cst_23 {dimension_numbers = #tpu.dot_dimension_numbers<[1], [0], [0], [1], [0, 0, 1, 1], [], []>} : vector<256x4xbf16>, vector<4x8xbf16>, vector<256x8xf32> -> vector<256x8xf32>
    %45 = arith.addf %39, %44 : vector<256x8xf32>
    %c2_i32 = arith.constant 2 : i32
    %46 = arith.addi %0, %c2_i32 : i32
    %c0_24 = arith.constant 0 : index
    %47 = arith.index_cast %46 : i32 to index
    %c0_25 = arith.constant 0 : index
    %c0_26 = arith.constant 0 : index
    %48 = vector.load %arg2[%c0_24, %47, %c0_25, %c0_26] : memref<1x18x18x4xbf16, #tpu.memory_space<vmem>>, vector<1x16x18x4xbf16>
    %49 = vector.shape_cast %48 : vector<1x16x18x4xbf16> to vector<16x18x4xbf16>
    %50 = vector.extract_strided_slice %49 {offsets = [0, 0, 0], sizes = [16, 16, 4], strides = [1, 1, 1]} : vector<16x18x4xbf16> to vector<16x16x4xbf16>
    %51 = vector.shape_cast %50 : vector<16x16x4xbf16> to vector<256x4xbf16>
    %c6 = arith.constant 6 : index
    %c0_27 = arith.constant 0 : index
    %c0_28 = arith.constant 0 : index
    %52 = vector.load %arg3[%c6, %c0_27, %c0_28] : memref<9x4x8xbf16, #tpu.memory_space<vmem>>, vector<1x4x8xbf16>
    %53 = vector.shape_cast %52 : vector<1x4x8xbf16> to vector<4x8xbf16>
    %cst_29 = arith.constant dense<0.000000e+00> : vector<256x8xf32>
    %54 = tpu.matmul %51, %53, %cst_29 {dimension_numbers = #tpu.dot_dimension_numbers<[1], [0], [0], [1], [0, 0, 1, 1], [], []>} : vector<256x4xbf16>, vector<4x8xbf16>, vector<256x8xf32> -> vector<256x8xf32>
    %55 = arith.addf %45, %54 : vector<256x8xf32>
    %56 = vector.extract_strided_slice %49 {offsets = [0, 1, 0], sizes = [16, 16, 4], strides = [1, 1, 1]} : vector<16x18x4xbf16> to vector<16x16x4xbf16>
    %57 = vector.shape_cast %56 : vector<16x16x4xbf16> to vector<256x4xbf16>
    %c7 = arith.constant 7 : index
    %c0_30 = arith.constant 0 : index
    %c0_31 = arith.constant 0 : index
    %58 = vector.load %arg3[%c7, %c0_30, %c0_31] : memref<9x4x8xbf16, #tpu.memory_space<vmem>>, vector<1x4x8xbf16>
    %59 = vector.shape_cast %58 : vector<1x4x8xbf16> to vector<4x8xbf16>
    %cst_32 = arith.constant dense<0.000000e+00> : vector<256x8xf32>
    %60 = tpu.matmul %57, %59, %cst_32 {dimension_numbers = #tpu.dot_dimension_numbers<[1], [0], [0], [1], [0, 0, 1, 1], [], []>} : vector<256x4xbf16>, vector<4x8xbf16>, vector<256x8xf32> -> vector<256x8xf32>
    %61 = arith.addf %55, %60 : vector<256x8xf32>
    %62 = vector.extract_strided_slice %49 {offsets = [0, 2, 0], sizes = [16, 16, 4], strides = [1, 1, 1]} : vector<16x18x4xbf16> to vector<16x16x4xbf16>
    %63 = vector.shape_cast %62 : vector<16x16x4xbf16> to vector<256x4xbf16>
    %c8 = arith.constant 8 : index
    %c0_33 = arith.constant 0 : index
    %c0_34 = arith.constant 0 : index
    %64 = vector.load %arg3[%c8, %c0_33, %c0_34] : memref<9x4x8xbf16, #tpu.memory_space<vmem>>, vector<1x4x8xbf16>
    %65 = vector.shape_cast %64 : vector<1x4x8xbf16> to vector<4x8xbf16>
    %cst_35 = arith.constant dense<0.000000e+00> : vector<256x8xf32>
    %66 = tpu.matmul %63, %65, %cst_35 {dimension_numbers = #tpu.dot_dimension_numbers<[1], [0], [0], [1], [0, 0, 1, 1], [], []>} : vector<256x4xbf16>, vector<4x8xbf16>, vector<256x8xf32> -> vector<256x8xf32>
    %67 = arith.addf %61, %66 : vector<256x8xf32>
    %68 = vector.shape_cast %67 : vector<256x8xf32> to vector<1x16x16x8xf32>
    %c0_36 = arith.constant 0 : index
    %c0_37 = arith.constant 0 : index
    %c0_38 = arith.constant 0 : index
    %c0_39 = arith.constant 0 : index
    %69 = vector.load %arg4[%c0_36, %c0_37, %c0_38, %c0_39] : memref<1x16x16x8xf32, #tpu.memory_space<vmem>>, vector<1x16x16x8xf32>
    tpu.vector_store %arg4[%c0_36, %c0_37, %c0_38, %c0_39], %68 {strides = array<i32>} : memref<1x16x16x8xf32, #tpu.memory_space<vmem>>, vector<1x16x16x8xf32>,
    return
  }
  func.func @transform_0(%arg0: i32, %arg1: i32) -> (i32, i32, i32, i32) {
    %c0_i32 = arith.constant 0 : i32
    %c0_i32_0 = arith.constant 0 : i32
    %c0_i32_1 = arith.constant 0 : i32
    %c0_i32_2 = arith.constant 0 : i32
    return %arg0, %c0_i32, %c0_i32_0, %c0_i32_1 : i32, i32, i32, i32
  }
  func.func @transform_1(%arg0: i32, %arg1: i32) -> (i32, i32, i32) {
    %c0_i32 = arith.constant 0 : i32
    %c0_i32_0 = arith.constant 0 : i32
    %c0_i32_1 = arith.constant 0 : i32
    %c0_i32_2 = arith.constant 0 : i32
    return %c0_i32, %c0_i32_0, %c0_i32_1 : i32, i32, i32
  }
  func.func @transform_2(%arg0: i32, %arg1: i32) -> (i32, i32, i32, i32) {
    %c0_i32 = arith.constant 0 : i32
    %c0_i32_0 = arith.constant 0 : i32
    %c0_i32_1 = arith.constant 0 : i32
    return %arg0, %arg1, %c0_i32, %c0_i32_0 : i32, i32, i32, i32
  }
}

</mosaic_0001>

<bundles_post_ra>
// kernel: tpu_custom_call.1
= control target key start
LH: loop header
LB: loop body
LE: loop exit
PB: predicated region body
PF: predicated region fallthrough
CT: control target
= control target key end

     0   :  { %s6079_s9 = smov 0   ;;  %s6081_s10 = smov 0   ;;  %s8134_s0 = inlined_call_operand.vmem [shape: bf16[2,18,18,4], index: 0, kind: input, shape index: {}]   ;;  %s8135_s1 = inlined_call_operand.vmem [shape: bf16[9,4,8], index: 1, kind: input, shape index: {}]   ;;  %s8136_s2 = inlined_call_operand.vmem [shape: f32[2,16,16,8], index: 2, kind: output, shape index: {}]  }
   0x1   :  { %s6083_s11 = smov 0  }
   0x2 LB: > { %s24_s12 = sadd.s32 1, %s6058_s10  ;;  %p4681_p0 = scmp.ge.s32.totalorder %s6062_s11, 1  ;;  %s6062_s11 = sphi %s6083_s11, %s12_s11   ;;  %s6058_s10 = sphi %s6081_s10, %s8250_s10   ;;  %s6054_s9 = sphi %s6079_s9, %s8249_s9  }
   0x3   : > { %p26_p1 = scmp.ge.s32.totalorder %s24_s12, 2  ;;  %p126_p2 = scmp.lt.s32.totalorder %s6062_s11, 3 }
   0x5   : > { %s8252_s12 = smov (%p26_p1, %s24_s12), 0  ;;  %p127_p3 = pnand %p4681_p0, %p126_p2 }
   0x7   : > { %130 = sbr.rel (%p127_p3) target bundleno = 588 (0x24c), region = 28 }
   0xe   : > { %v4685_v0 = vld [vmem:[%s8135_s1 + $0x2] sm:$0x3]  ;;  %vm709_vm0 = vcmask 1041408   ;;  %v4880_v1 = vld [vmem:[%s8135_s1 + $0x8] sm:$0x3]  ;;  %p153_p4 = scmp.lt.s32.totalorder %s6054_s9, 1 }
   0xf   : > { %5845 = vmatprep.subr.msk.bf16.mxu1 %vm709_vm0, %v4685_v0  ;;  %5849 = vmatprep.subr.msk.bf16.mxu0 %vm709_vm0, %v4880_v1  ;;  %v711_v2 = vsel %vm709_vm0, %v4685_v0, 0  ;;  %v6107_v3 = vsel %vm709_vm0, %v4880_v1, 0  ;;  %v222_v4 = vld [vmem:[%s8135_s1] sm:$0x3]  ;;  %v4929_v5 = vld [vmem:[%s8135_s1 + $0xa] sm:$0x3] }
  0x10   : > { %8159 = vst [vmem:[#allocation2_spill] sm:$0xff] %v6107_v3  ;;  %5282 = vmatpush3.bf16.msra.mxu1 %v711_v2  ;;  %5418 = vmatpush3.bf16.msra.mxu0 %v6107_v3  ;;  %s8254_s9 = smov (!%p153_p4, %s6054_s9), 1  ;;  %vm223_vm1 = vsmask.f32 3328  ;;  %vm224_vm2 = vsmask.f32 7440 }
  0x11   : > { %5846 = vmatprep.subr.msk.bf16.mxu1 %vm709_vm0, %v222_v4  ;;  %5851 = vmatprep.subr.msk.bf16.mxu0 %vm709_vm0, %v4929_v5  ;;  %s5855_s21 = smul.u32 216, %s8254_s9  ;;  %vm660_vm3 = vcmask 31744   ;;  %v6139_v17 = vsel %vm709_vm0, %v222_v4, 0  ;;  %vm6150_vm4 = vmor %vm223_vm1, %vm224_vm2  ;;  %v6155_v36 = vsel %vm709_vm0, %v4929_v5, 0  ;;  %v6165_v50 = vld [vmem:[%s8135_s1 + $0xc] sm:$0x3] }
  0x12   : > { %v6182_v1 = vsel %vm709_vm0, %v6165_v50, 0  ;;  %vm1182_vm5 = vcmask 1042432   ;;  %vm1183_vm6 = vcmask 1046532   ;;  %s5127_s15 = sshll.u32 %s8254_s9, 8  ;;  %vm4547_vm8 = vcmask 64512  }
  0x13   : > { %s6124_s24 = scalar_lea.vmem %s8134_s0, %s5855_s21  ;;  %vm6416_vm7 = vmor %vm1182_vm5, %vm1183_vm6  ;;  %s8059_s18 = scalar_lea.vmem %s8136_s2, %s5127_s15 }
  0x14   : > { %v174_v6 = vld [vmem:[%s6124_s24] sm:$0xf]  ;;  %v175_v7 = vld [vmem:[%s6124_s24 + $0x4] sm:$0xf]  ;;  %v176_v8 = vld [vmem:[%s6124_s24 + $0x8] sm:$0x1] }
  0x15   : > { %v227_v9 = vshrl.u32 %v174_v6, 16  ;;  %v230_v10 = vshll.u32 %v174_v6, 16  ;;  %v236_v11 = vshll.u32 %v175_v7, 16  ;;  %v240_v12 = vshrl.u32 %v175_v7, 16  ;;  %v6130_v13 = vld [vmem:[%s6124_s24 + $0xc] sm:$0xf] }
  0x16   : > { %v246_v14 = vshll.u32 %v176_v8, 16  ;;  %v6133_v15 = vld [vmem:[%s6124_s24 + $0x10] sm:$0xf]  ;;  %v6136_v16 = vld [vmem:[%s6124_s24 + $0x14] sm:$0x1]  ;;  %v1970_v23 = vshrl.u32 %v6130_v13, 16 }
  0x17   : > { %v229_v18 = vrot.slane %v227_v9, 4  ;;  %v232_v19 = vrot.slane %v230_v10, 5  ;;  %v238_v20 = vrot.slane %v236_v11, 5  ;;  %v242_v21 = vrot.slane %v240_v12, 4  ;;  %v177_v30 = vld [vmem:[%s6124_s24 + $0xc] sm:$0xf] }
  0x18   : > { %v248_v22 = vrot.slane %v246_v14, 5  ;;  %v1973_v24 = vshll.u32 %v6130_v13, 16  ;;  %v1979_v25 = vshll.u32 %v6133_v15, 16  ;;  %v1983_v28 = vshrl.u32 %v6133_v15, 16  ;;  %v178_v31 = vld [vmem:[%s6124_s24 + $0x10] sm:$0xf] }
  0x19   : > { %v233_v26 = vor.u32 %v232_v19, %v229_v18  ;;  %v243_v27 = vor.u32 %v242_v21, %v238_v20  ;;  %v1989_v29 = vshll.u32 %v6136_v16, 16  ;;  %v1972_v33 = vrot.slane %v1970_v23, 4  ;;  %v179_v42 = vld [vmem:[%s6124_s24 + $0x14] sm:$0x1]  ;;  %v6168_v55 = vld [vmem:[%s6124_s24 + $0x18] sm:$0xf] }
  0x1a   : > { %v1975_v34 = vrot.slane %v1973_v24, 5  ;;  %v1981_v35 = vrot.slane %v1979_v25, 5  ;;  %v1985_v39 = vrot.slane %v1983_v28, 4  ;;  %v251_v43 = vshrl.u32 %v177_v30, 16  ;;  %v6171_v60 = vld [vmem:[%s6124_s24 + $0x1c] sm:$0xf] }
  0x1b   : > { %v234_v37 = vrot.slane %v233_v26, 4  ;;  %v244_v38 = vrot.slane %v243_v27, 4  ;;  %v1991_v40 = vrot.slane %v1989_v29, 5  ;;  %v254_v44 = vshll.u32 %v177_v30, 16  ;;  %v6178_v0 = vld [vmem:[%s6124_s24 + $0x20] sm:$0x1] }
  0x1c   : > { %v1976_v41 = vor.u32 %v1975_v34, %v1972_v33  ;;  %v260_v45 = vshll.u32 %v178_v31, 16  ;;  %v1986_v48 = vor.u32 %v1985_v39, %v1981_v35  ;;  %v264_v49 = vshrl.u32 %v178_v31, 16  ;;  %v180_v11 = vld [vmem:[%s6124_s24 + $0x18] sm:$0xf]  ;;  %v182_v25 = vld [vmem:[%s6124_s24 + $0x20] sm:$0x1] }
  0x1d   : > { %v239_v46 = vsel %vm6150_vm4, %v234_v37, %v238_v20  ;;  %v249_v47 = vsel %vm6150_vm4, %v244_v38, %v248_v22  ;;  %v253_v53 = vrot.slane %v251_v43, 4  ;;  %v256_v54 = vrot.slane %v254_v44, 5  ;;  %v181_v20 = vld [vmem:[%s6124_s24 + $0x1c] sm:$0xf]  ;;  %v6202_v30 = vld [vmem:[%s6124_s24 + $0x24] sm:$0xf] }
  0x1e   : > { %v4686_v51 = vcombine.low %v239_v46, %v249_v47  ;;  %v1977_v52 = vrot.slane %v1976_v41, 4  ;;  %v1987_v56 = vrot.slane %v1986_v48, 4  ;;  %v262_v57 = vrot.slane %v260_v45, 5  ;;  %v4766_v41 = vld [vmem:[%s8135_s1 + $0x4] sm:$0x3] }
  0x1f   : > { %v266_v58 = vrot.slane %v264_v49, 4  ;;  %v270_v59 = vshll.u32 %v179_v42, 16  ;;  %v2668_v62 = vrot.slane %v6136_v16, 5  ;;  %v257_v63 = vor.u32 %v256_v54, %v253_v53  ;;  %v6209_v45 = vld [vmem:[%s6124_s24 + $0x28] sm:$0xf] }
  0x20   : > { %5283 = vmatprep.mubr.msk.bf16.mxu1 %vm660_vm3, %v4686_v51  ;;  %v1982_v61 = vsel %vm6150_vm4, %v1977_v52, %v1981_v35  ;;  %v1992_v2 = vsel %vm6150_vm4, %v1987_v56, %v1991_v40  ;;  %v1994_v6 = vshrl.u32 %v6168_v55, 16  ;;  %v1997_v9 = vshll.u32 %v6168_v55, 16  ;;  %v6214_v52 = vld [vmem:[%s6124_s24 + $0x2c] sm:$0x1]  ;;  %v6998_v3 = vld [vmem:[%s6124_s24 + $0xb8] sm:$0xf] }
  0x21   : > { %v267_v4 = vor.u32 %v266_v58, %v262_v57  ;;  %v272_v5 = vrot.slane %v270_v59, 5  ;;  %v4881_v7 = vcombine.low %v1982_v61, %v1992_v2  ;;  %v258_v8 = vrot.slane %v257_v63, 4  ;;  %v183_v58 = vld [vmem:[%s6124_s24 + $0x24] sm:$0xf] }
  0x22   : > { %v2003_v10 = vshll.u32 %v6171_v60, 16  ;;  %v1996_v14 = vrot.slane %v1994_v6, 4  ;;  %v2007_v18 = vshrl.u32 %v6171_v60, 16  ;;  %v2013_v19 = vshll.u32 %v6178_v0, 16 }
  0x23   : > { %v268_v12 = vrot.slane %v267_v4, 4  ;;  %5419 = vmatprep.mubr.msk.bf16.mxu0 %vm660_vm3, %v4881_v7  ;;  %v263_v21 = vsel %vm6150_vm4, %v258_v8, %v262_v57  ;;  %v1999_v22 = vrot.slane %v1997_v9, 5  ;;  %v2672_v24 = vrot.slane %v6171_v60, 5  ;;  %v184_v7 = vld [vmem:[%s6124_s24 + $0x28] sm:$0xf] }
  0x24   : > { %v2005_v23 = vrot.slane %v2003_v10, 5  ;;  %v2009_v27 = vrot.slane %v2007_v18, 4  ;;  %v2015_v28 = vrot.slane %v2013_v19, 5  ;;  %v2675_v29 = vrot.slane %v6178_v0, 5  ;;  %v185_v19 = vld [vmem:[%s6124_s24 + $0x2c] sm:$0x1] }
  0x25   : > { %v273_v26 = vsel %vm6150_vm4, %v268_v12, %v272_v5  ;;  %v2000_v33 = vor.u32 %v1999_v22, %v1996_v14  ;;  %v275_v34 = vshrl.u32 %v180_v11, 16  ;;  %v278_v35 = vshll.u32 %v180_v11, 16 }
  0x26   : > { %v4687_v31 = vcombine.low %v263_v21, %v273_v26  ;;  %v2010_v37 = vor.u32 %v2009_v27, %v2005_v23  ;;  %v284_v38 = vshll.u32 %v181_v20, 16  ;;  %v288_v39 = vshrl.u32 %v181_v20, 16  ;;  %v6232_v21 = vld [vmem:[%s6124_s24 + $0x30] sm:$0xf] }
  0x27   : > { %v294_v40 = vshll.u32 %v182_v25, 16  ;;  %v2001_v42 = vrot.slane %v2000_v33, 4  ;;  %v277_v43 = vrot.slane %v275_v34, 4  ;;  %v280_v44 = vrot.slane %v278_v35, 5  ;;  %v6238_v34 = vld [vmem:[%s6124_s24 + $0x34] sm:$0xf] }
  0x28   : > { %5284 = vmatmul.mubr.msk.bf16.vlgmr.msra.gmra.mrb[0].mxu1 %vm660_vm3, %v4687_v31  ;;  %v2018_v46 = vshrl.u32 %v6202_v30, 16  ;;  %v2011_v47 = vrot.slane %v2010_v37, 4  ;;  %v286_v48 = vrot.slane %v284_v38, 5  ;;  %v290_v49 = vrot.slane %v288_v39, 4 }
  0x29   : > { %5316 = vmatpush3.bf16.msra.mxu1 %v6139_v17  ;;  %v296_v51 = vrot.slane %v294_v40, 5  ;;  %v2006_v53 = vsel %vm6150_vm4, %v2001_v42, %v2005_v23  ;;  %v281_v54 = vor.u32 %v280_v44, %v277_v43  ;;  %v2021_v57 = vshll.u32 %v6202_v30, 16  ;;  %v6247_v42 = vld [vmem:[%s6124_s24 + $0x38] sm:$0x1]  ;;  %v6251_v44 = vld [vmem:[%s6124_s24 + $0x30] sm:$0xf] }
  0x2a   : > { %v2020_v56 = vrot.slane %v2018_v46, 4  ;;  %5847 = vmatprep.subr.msk.bf16.mxu1 %vm709_vm0, %v4766_v41  ;;  %v2016_v17 = vsel %vm6150_vm4, %v2011_v47, %v2015_v28  ;;  %v291_v59 = vor.u32 %v290_v49, %v286_v48  ;;  %v2027_v61 = vshll.u32 %v6209_v45, 16 }
  0x2b   : > { %v2031_v63 = vshrl.u32 %v6209_v45, 16  ;;  %v4882_v2 = vcombine.low %v2006_v53, %v2016_v17  ;;  %v282_v4 = vrot.slane %v281_v54, 4  ;;  %v2023_v5 = vrot.slane %v2021_v57, 5 }
  0x2c   : > { %v2037_v6 = vshll.u32 %v6214_v52, 16  ;;  %v292_v8 = vrot.slane %v291_v59, 4  ;;  %v2029_v9 = vrot.slane %v2027_v61, 5  ;;  %v299_v11 = vshrl.u32 %v183_v58, 16 }
  0x2d   : > { %v2033_v10 = vrot.slane %v2031_v63, 4  ;;  %5420 = vmatmul.mubr.msk.bf16.vlgmr.msra.gmra.mrb[0].mxu0 %vm660_vm3, %v4882_v2  ;;  %v287_v12 = vsel %vm6150_vm4, %v282_v4, %v286_v48  ;;  %v2024_v14 = vor.u32 %v2023_v5, %v2020_v56  ;;  %v302_v20 = vshll.u32 %v183_v58, 16  ;;  %v6257_v56 = vld [vmem:[%s6124_s24 + $0x34] sm:$0xf]  ;;  %v188_v4 = vld [vmem:[%s6124_s24 + $0x38] sm:$0x1] }
  0x2e   : > { %v2039_v18 = vrot.slane %v2037_v6, 5  ;;  %5452 = vmatpush3.bf16.msra.mxu0 %v6155_v36  ;;  %v297_v22 = vsel %vm6150_vm4, %v292_v8, %v296_v51  ;;  %v301_v25 = vrot.slane %v299_v11, 4  ;;  %v308_v26 = vshll.u32 %v184_v7, 16 }
  0x2f   : > { %v2034_v23 = vor.u32 %v2033_v10, %v2029_v9  ;;  %v4688_v27 = vcombine.low %v287_v12, %v297_v22  ;;  %v2025_v28 = vrot.slane %v2024_v14, 4  ;;  %v304_v31 = vrot.slane %v302_v20, 5  ;;  %5852 = vmatprep.subr.msk.bf16.mxu0 %vm709_vm0, %v6165_v50  ;;  %v6269_v10 = vld [vmem:[%s6124_s24 + $0x3c] sm:$0xf] }
  0x30   : > { %v312_v33 = vshrl.u32 %v184_v7, 16  ;;  %v310_v37 = vrot.slane %v308_v26, 5  ;;  %v318_v36 = vshll.u32 %v185_v19, 16  ;;  %v2042_v38 = vshrl.u32 %v6232_v21, 16  ;;  %v6275_v19 = vld [vmem:[%s6124_s24 + $0x40] sm:$0xf] }
  0x31   : > { %v2035_v35 = vrot.slane %v2034_v23, 4  ;;  %5287 = vmatprep.mubr.msk.bf16.mxu1 %vm660_vm3, %v4688_v27  ;;  %v2030_v39 = vsel %vm6150_vm4, %v2025_v28, %v2029_v9  ;;  %v305_v40 = vor.u32 %v304_v31, %v301_v25  ;;  %v2045_v43 = vshll.u32 %v6232_v21, 16  ;;  %v6280_v31 = vld [vmem:[%s6124_s24 + $0x44] sm:$0x1] }
  0x32   : > { %v314_v41 = vrot.slane %v312_v33, 4  ;;  %v320_v46 = vrot.slane %v318_v36, 5  ;;  %v2044_v47 = vrot.slane %v2042_v38, 4  ;;  %v2051_v48 = vshll.u32 %v6238_v34, 16 }
  0x33   : > { %v2040_v50 = vsel %vm6150_vm4, %v2035_v35, %v2039_v18  ;;  %v306_v51 = vrot.slane %v305_v40, 4  ;;  %v2047_v54 = vrot.slane %v2045_v43, 5  ;;  %v2055_v58 = vshrl.u32 %v6238_v34, 16 }
  0x34   : > { %v4883_v49 = vcombine.low %v2030_v39, %v2040_v50  ;;  %v315_v53 = vor.u32 %v314_v41, %v310_v37  ;;  %v2053_v57 = vrot.slane %v2051_v48, 5  ;;  %v2061_v17 = vshll.u32 %v6247_v42, 16  ;;  %v6288_v50 = vld [vmem:[%s6124_s24 + $0x3c] sm:$0xf] }
  0x35   : > { %v323_v59 = vshrl.u32 %v6251_v44, 16  ;;  %v311_v61 = vsel %vm6150_vm4, %v306_v51, %v310_v37  ;;  %v2048_v2 = vor.u32 %v2047_v54, %v2044_v47  ;;  %v326_v5 = vshll.u32 %v6251_v44, 16  ;;  %v6294_v51 = vld [vmem:[%s6124_s24 + $0x40] sm:$0xf] }
  0x36   : > { %5423 = vmatprep.mubr.msk.bf16.mxu0 %vm660_vm3, %v4883_v49  ;;  %v316_v63 = vrot.slane %v315_v53, 4  ;;  %v2057_v6 = vrot.slane %v2055_v58, 4  ;;  %v2063_v7 = vrot.slane %v2061_v17, 5  ;;  %v332_v9 = vshll.u32 %v6257_v56, 16 }
  0x37   : > { %v325_v8 = vrot.slane %v323_v59, 4  ;;  %v2049_v12 = vrot.slane %v2048_v2, 4  ;;  %v328_v14 = vrot.slane %v326_v5, 5  ;;  %v336_v18 = vshrl.u32 %v6257_v56, 16 }
  0x38   : > { %v321_v11 = vsel %vm6150_vm4, %v316_v63, %v320_v46  ;;  %v2058_v22 = vor.u32 %v2057_v6, %v2053_v57  ;;  %v334_v23 = vrot.slane %v332_v9, 5  ;;  %v342_v25 = vshll.u32 %v188_v4, 16 }
  0x39   : > { %v4689_v20 = vcombine.low %v311_v61, %v321_v11  ;;  %v2054_v26 = vsel %vm6150_vm4, %v2049_v12, %v2053_v57  ;;  %v329_v27 = vor.u32 %v328_v14, %v325_v8  ;;  %v338_v28 = vrot.slane %v336_v18, 4  ;;  %v191_v61 = vld [vmem:[%s6124_s24 + $0x44] sm:$0x1]  ;;  %v6307_v8 = vld [vmem:[%s6124_s24 + $0x48] sm:$0xf] }
  0x3a   : > { %v2066_v33 = vshrl.u32 %v6269_v10, 16  ;;  %v2059_v35 = vrot.slane %v2058_v22, 4  ;;  %v344_v37 = vrot.slane %v342_v25, 5  ;;  %v2069_v36 = vshll.u32 %v6269_v10, 16  ;;  %v6310_v18 = vld [vmem:[%s6124_s24 + $0x4c] sm:$0xf] }
  0x3b   : > { %5288 = vmatmul.mubr.msk.bf16.gmra.mrb[4].mxu1 %vm660_vm3, %v4689_v20  ;;  %v2075_v38 = vshll.u32 %v6275_v19, 16  ;;  %v330_v39 = vrot.slane %v329_v27, 4  ;;  %v339_v40 = vor.u32 %v338_v28, %v334_v23  ;;  %v2079_v43 = vshrl.u32 %v6275_v19, 16  ;;  %v6316_v28 = vld [vmem:[%s6124_s24 + $0x50] sm:$0x1] }
  0x3c   : > { %v2068_v41 = vrot.slane %v2066_v33, 4  ;;  %v2064_v46 = vsel %vm6150_vm4, %v2059_v35, %v2063_v7  ;;  %v2071_v47 = vrot.slane %v2069_v36, 5  ;;  %v2085_v49 = vshll.u32 %v6280_v31, 16 }
  0x3d   : > { %v2077_v48 = vrot.slane %v2075_v38, 5  ;;  %v4884_v53 = vcombine.low %v2054_v26, %v2064_v46  ;;  %v335_v54 = vsel %vm6150_vm4, %v330_v39, %v334_v23  ;;  %v340_v57 = vrot.slane %v339_v40, 4  ;;  %v6324_v40 = vld [vmem:[%s6124_s24 + $0x48] sm:$0xf] }
  0x3e   : > { %v2081_v58 = vrot.slane %v2079_v43, 4  ;;  %v2072_v17 = vor.u32 %v2071_v47, %v2068_v41  ;;  %v2087_v59 = vrot.slane %v2085_v49, 5  ;;  %v347_v63 = vshrl.u32 %v6288_v50, 16 }
  0x3f   : > { %v350_v2 = vshll.u32 %v6288_v50, 16  ;;  %5424 = vmatmul.mubr.msk.bf16.gmra.mrb[4].mxu0 %vm660_vm3, %v4884_v53  ;;  %v345_v4 = vsel %vm6150_vm4, %v340_v57, %v344_v37  ;;  %v356_v6 = vshll.u32 %v6294_v51, 16  ;;  %v360_v7 = vshrl.u32 %v6294_v51, 16 }
  0x40   : > { %v2082_v5 = vor.u32 %v2081_v58, %v2077_v48  ;;  %v4690_v9 = vcombine.low %v335_v54, %v345_v4  ;;  %v2073_v11 = vrot.slane %v2072_v17, 4  ;;  %v349_v12 = vrot.slane %v347_v63, 4 }
  0x41   : > { %v352_v14 = vrot.slane %v350_v2, 5  ;;  %v358_v22 = vrot.slane %v356_v6, 5  ;;  %v362_v23 = vrot.slane %v360_v7, 4  ;;  %v366_v25 = vshll.u32 %v191_v61, 16  ;;  %v6341_v7 = vld [vmem:[%s6124_s24 + $0x54] sm:$0xf] }
  0x42   : > { %v2083_v20 = vrot.slane %v2082_v5, 4  ;;  %5291 = vmatprep.mubr.msk.bf16.mxu1 %vm660_vm3, %v4690_v9  ;;  %v2078_v26 = vsel %vm6150_vm4, %v2073_v11, %v2077_v48  ;;  %v2090_v33 = vshrl.u32 %v6307_v8, 16  ;;  %v2093_v35 = vshll.u32 %v6307_v8, 16  ;;  %v6327_v48 = vld [vmem:[%s6124_s24 + $0x4c] sm:$0xf] }
  0x43   : > { %v353_v27 = vor.u32 %v352_v14, %v349_v12  ;;  %v363_v36 = vor.u32 %v362_v23, %v358_v22  ;;  %v368_v38 = vrot.slane %v366_v25, 5  ;;  %v2099_v39 = vshll.u32 %v6310_v18, 16 }
  0x44   : > { %v2088_v37 = vsel %vm6150_vm4, %v2083_v20, %v2087_v59  ;;  %v2092_v46 = vrot.slane %v2090_v33, 4  ;;  %v2095_v47 = vrot.slane %v2093_v35, 5  ;;  %v2103_v54 = vshrl.u32 %v6310_v18, 16  ;;  %v194_v59 = vld [vmem:[%s6124_s24 + $0x50] sm:$0x1] }
  0x45   : > { %v4885_v41 = vcombine.low %v2078_v26, %v2088_v37  ;;  %v354_v43 = vrot.slane %v353_v27, 4  ;;  %v364_v49 = vrot.slane %v363_v36, 4  ;;  %v2101_v53 = vrot.slane %v2099_v39, 5  ;;  %v6344_v20 = vld [vmem:[%s6124_s24 + $0x58] sm:$0xf] }
  0x46   : > { %v2109_v57 = vshll.u32 %v6316_v28, 16  ;;  %v2096_v17 = vor.u32 %v2095_v47, %v2092_v46  ;;  %v371_v61 = vshrl.u32 %v6324_v40, 16  ;;  %v374_v63 = vshll.u32 %v6324_v40, 16  ;;  %v6351_v35 = vld [vmem:[%s6124_s24 + $0x5c] sm:$0x1] }
  0x47   : > { %5427 = vmatprep.mubr.msk.bf16.mxu0 %vm660_vm3, %v4885_v41  ;;  %v359_v58 = vsel %vm6150_vm4, %v354_v43, %v358_v22  ;;  %v369_v2 = vsel %vm6150_vm4, %v364_v49, %v368_v38  ;;  %v2105_v4 = vrot.slane %v2103_v54, 4  ;;  %v380_v6 = vshll.u32 %v6327_v48, 16 }
  0x48   : > { %v2111_v5 = vrot.slane %v2109_v57, 5  ;;  %v4691_v9 = vcombine.low %v359_v58, %v369_v2  ;;  %v2097_v11 = vrot.slane %v2096_v17, 4  ;;  %v373_v12 = vrot.slane %v371_v61, 4  ;;  %v6364_v61 = vld [vmem:[%s6124_s24 + $0x58] sm:$0xf] }
  0x49   : > { %v376_v14 = vrot.slane %v374_v63, 5  ;;  %v2106_v22 = vor.u32 %v2105_v4, %v2101_v53  ;;  %v382_v23 = vrot.slane %v380_v6, 5  ;;  %v384_v25 = vshrl.u32 %v6327_v48, 16 }
  0x4a   : > { %v390_v26 = vshll.u32 %v194_v59, 16  ;;  %5292 = vmatmul.mubr.msk.bf16.gmra.mrb[8].mxu1 %vm660_vm3, %v4691_v9  ;;  %v2102_v27 = vsel %vm6150_vm4, %v2097_v11, %v2101_v53  ;;  %v2114_v37 = vshrl.u32 %v6341_v7, 16  ;;  %v2117_v36 = vshll.u32 %v6341_v7, 16  ;;  %v6358_v53 = vld [vmem:[%s6124_s24 + $0x54] sm:$0xf] }
  0x4b   : > { %v377_v33 = vor.u32 %v376_v14, %v373_v12  ;;  %v2107_v38 = vrot.slane %v2106_v22, 4  ;;  %v386_v39 = vrot.slane %v384_v25, 4  ;;  %v2123_v43 = vshll.u32 %v6344_v20, 16  ;;  %v197_v9 = vld [vmem:[%s6124_s24 + $0x5c] sm:$0x1] }
  0x4c   : > { %v392_v41 = vrot.slane %v390_v26, 5  ;;  %v2116_v47 = vrot.slane %v2114_v37, 4  ;;  %v2119_v49 = vrot.slane %v2117_v36, 5  ;;  %v2127_v54 = vshrl.u32 %v6344_v20, 16 }
  0x4d   : > { %v378_v46 = vrot.slane %v377_v33, 4  ;;  %v2112_v57 = vsel %vm6150_vm4, %v2107_v38, %v2111_v5  ;;  %v387_v58 = vor.u32 %v386_v39, %v382_v23  ;;  %v2125_v17 = vrot.slane %v2123_v43, 5  ;;  %v6380_v39 = vld [vmem:[%s6124_s24 + $0x64] sm:$0xf] }
  0x4e   : > { %v2133_v59 = vshll.u32 %v6351_v35, 16  ;;  %v4886_v63 = vcombine.low %v2102_v27, %v2112_v57  ;;  %v2120_v4 = vor.u32 %v2119_v49, %v2116_v47  ;;  %v2129_v6 = vrot.slane %v2127_v54, 4 }
  0x4f   : > { %v383_v2 = vsel %vm6150_vm4, %v378_v46, %v382_v23  ;;  %v388_v11 = vrot.slane %v387_v58, 4  ;;  %v395_v14 = vshrl.u32 %v6358_v53, 16  ;;  %v398_v5 = vshll.u32 %v6358_v53, 16  ;;  %v6375_v23 = vld [vmem:[%s6124_s24 + $0x60] sm:$0xf] }
  0x50   : > { %v2135_v12 = vrot.slane %v2133_v59, 5  ;;  %5428 = vmatmul.mubr.msk.bf16.gmra.mrb[8].mxu0 %vm660_vm3, %v4886_v63  ;;  %v2121_v22 = vrot.slane %v2120_v4, 4  ;;  %v2130_v25 = vor.u32 %v2129_v6, %v2125_v17  ;;  %v404_v26 = vshll.u32 %v6364_v61, 16  ;;  %v6385_v59 = vld [vmem:[%s6124_s24 + $0x68] sm:$0x1] }
  0x51   : > { %v408_v27 = vshrl.u32 %v6364_v61, 16  ;;  %v393_v33 = vsel %vm6150_vm4, %v388_v11, %v392_v41  ;;  %v397_v37 = vrot.slane %v395_v14, 4  ;;  %v400_v36 = vrot.slane %v398_v5, 5  ;;  %v6395_v6 = vld [vmem:[%s6124_s24 + $0x60] sm:$0xf] }
  0x52   : > { %v414_v38 = vshll.u32 %v197_v9, 16  ;;  %v4692_v43 = vcombine.low %v383_v2, %v393_v33  ;;  %v2126_v46 = vsel %vm6150_vm4, %v2121_v22, %v2125_v17  ;;  %v2131_v47 = vrot.slane %v2130_v25, 4  ;;  %v6398_v22 = vld [vmem:[%s6124_s24 + $0x64] sm:$0xf] }
  0x53   : > { %v406_v49 = vrot.slane %v404_v26, 5  ;;  %v401_v54 = vor.u32 %v400_v36, %v397_v37  ;;  %v410_v57 = vrot.slane %v408_v27, 4  ;;  %v2138_v41 = vshrl.u32 %v6375_v23, 16 }
  0x54   : > { %v416_v58 = vrot.slane %v414_v38, 5  ;;  %5295 = vmatprep.mubr.msk.bf16.mxu1 %vm660_vm3, %v4692_v43  ;;  %v2136_v63 = vsel %vm6150_vm4, %v2131_v47, %v2135_v12  ;;  %v2141_v2 = vshll.u32 %v6375_v23, 16  ;;  %v2147_v4 = vshll.u32 %v6380_v39, 16 }
  0x55   : > { %v2151_v17 = vshrl.u32 %v6380_v39, 16  ;;  %v4887_v9 = vcombine.low %v2126_v46, %v2136_v63  ;;  %v402_v11 = vrot.slane %v401_v54, 4  ;;  %v411_v14 = vor.u32 %v410_v57, %v406_v49  ;;  %v200_v54 = vld [vmem:[%s6124_s24 + $0x68] sm:$0x1] }
  0x56   : > { %v2140_v5 = vrot.slane %v2138_v41, 4  ;;  %v2143_v25 = vrot.slane %v2141_v2, 5  ;;  %v2149_v26 = vrot.slane %v2147_v4, 5  ;;  %v2157_v12 = vshll.u32 %v6385_v59, 16 }
  0x57   : > { %v2153_v27 = vrot.slane %v2151_v17, 4  ;;  %5431 = vmatprep.mubr.msk.bf16.mxu0 %vm660_vm3, %v4887_v9  ;;  %v407_v33 = vsel %vm6150_vm4, %v402_v11, %v406_v49  ;;  %v412_v37 = vrot.slane %v411_v14, 4  ;;  %v419_v36 = vshrl.u32 %v6395_v6, 16  ;;  %v6412_v49 = vld [vmem:[%s6124_s24 + $0x6c] sm:$0xf] }
  0x58   : > { %v422_v38 = vshll.u32 %v6395_v6, 16  ;;  %v2144_v43 = vor.u32 %v2143_v25, %v2140_v5  ;;  %v2159_v47 = vrot.slane %v2157_v12, 5  ;;  %v428_v57 = vshll.u32 %v6398_v22, 16 }
  0x59   : > { %v2154_v46 = vor.u32 %v2153_v27, %v2149_v26  ;;  %v417_v41 = vsel %vm6150_vm4, %v412_v37, %v416_v58  ;;  %v421_v63 = vrot.slane %v419_v36, 4  ;;  %v432_v4 = vshrl.u32 %v6398_v22, 16 }
  0x5a   : > { %v424_v2 = vrot.slane %v422_v38, 5  ;;  %v4693_v17 = vcombine.low %v407_v33, %v417_v41  ;;  %v2145_v9 = vrot.slane %v2144_v43, 4  ;;  %v430_v14 = vrot.slane %v428_v57, 5  ;;  %v6428_v38 = vld [vmem:[%s6124_s24 + $0x70] sm:$0xf] }
  0x5b   : > { %v2155_v11 = vrot.slane %v2154_v46, 4  ;;  %v434_v25 = vrot.slane %v432_v4, 4  ;;  %v438_v27 = vshll.u32 %v200_v54, 16  ;;  %v4913_v58 = vrot.slane %v6130_v13, 9  ;;  %v203_v13 = vld [vmem:[%s6124_s24 + $0x74] sm:$0x1] }
  0x5c   : > { %v425_v5 = vor.u32 %v424_v2, %v421_v63  ;;  %5296 = vmatmul.mubr.msk.bf16.gmra.mrb[12].mxu1 %vm660_vm3, %v4693_v17  ;;  %v2150_v33 = vsel %vm6150_vm4, %v2145_v9, %v2149_v26  ;;  %v2665_v36 = vrot.slane %v6133_v15, 5  ;;  %v443_v43 = vshrl.u32 %v6412_v49, 16 }
  0x5d   : > { %v2160_v37 = vsel %vm6150_vm4, %v2155_v11, %v2159_v47  ;;  %v435_v57 = vor.u32 %v434_v25, %v430_v14  ;;  %v440_v41 = vrot.slane %v438_v27, 5  ;;  %v446_v47 = vshll.u32 %v6412_v49, 16 }
  0x5e   : > { %v4888_v46 = vcombine.low %v2150_v33, %v2160_v37  ;;  %v426_v54 = vrot.slane %v425_v5, 4  ;;  %v2666_v63 = vsel %vm6416_vm7, %v4913_v58, %v2665_v36  ;;  %v2667_v2 = vrot.slane %v2665_v36, 4  ;;  %v6446_v58 = vld [vmem:[%s6124_s24 + $0x78] sm:$0xf] }
  0x5f   : > { %v445_v26 = vrot.slane %v443_v43, 4  ;;  %v436_v4 = vrot.slane %v435_v57, 4  ;;  %v452_v17 = vshll.u32 %v6428_v38, 16  ;;  %v456_v9 = vshrl.u32 %v6428_v38, 16  ;;  %v6451_v43 = vld [vmem:[%s6124_s24 + $0x7c] sm:$0xf] }
  0x60   : > { %5432 = vmatmul.mubr.msk.bf16.gmra.mrb[12].mxu0 %vm660_vm3, %v4888_v46  ;;  %v431_v15 = vsel %vm6150_vm4, %v426_v54, %v430_v14  ;;  %v2669_v11 = vsel %vm6416_vm7, %v2667_v2, %v2668_v62  ;;  %v448_v5 = vrot.slane %v446_v47, 5  ;;  %v462_v25 = vshll.u32 %v203_v13, 16  ;;  %v206_v46 = vld [vmem:[%s6124_s24 + $0x80] sm:$0x1] }
  0x61   : > { %v4914_v27 = vrot.slane %v6168_v55, 9  ;;  %v441_v33 = vsel %vm6150_vm4, %v436_v4, %v440_v41  ;;  %v4930_v14 = vcombine.low %v2666_v63, %v2669_v11  ;;  %v454_v37 = vrot.slane %v452_v17, 5 }
  0x62   : > { %v458_v36 = vrot.slane %v456_v9, 4  ;;  %v4694_v54 = vcombine.low %v431_v15, %v441_v33  ;;  %v449_v16 = vor.u32 %v448_v5, %v445_v26  ;;  %v464_v57 = vrot.slane %v462_v25, 5  ;;  %v6476_v33 = vld [vmem:[%s6124_s24 + $0x88] sm:$0xf] }
  0x63   : > { %v2673_v62 = vsel %vm6416_vm7, %v4914_v27, %v2672_v24  ;;  %5453 = vmatprep.mubr.msk.bf16.mxu0 %vm660_vm3, %v4930_v14  ;;  %v2674_v41 = vrot.slane %v2672_v24, 4  ;;  %v467_v13 = vshrl.u32 %v6446_v58, 16  ;;  %v470_v63 = vshll.u32 %v6446_v58, 16  ;;  %v6473_v27 = vld [vmem:[%s6124_s24 + $0x84] sm:$0xf] }
  0x64   : > { %v459_v55 = vor.u32 %v458_v36, %v454_v37  ;;  %5299 = vmatprep.mubr.msk.bf16.mxu1 %vm660_vm3, %v4694_v54  ;;  %v450_v2 = vrot.slane %v449_v16, 4  ;;  %v476_v26 = vshll.u32 %v6451_v43, 16  ;;  %v480_v47 = vshrl.u32 %v6451_v43, 16 }
  0x65   : > { %v486_v15 = vshll.u32 %v206_v46, 16  ;;  %v2676_v60 = vsel %vm6416_vm7, %v2674_v41, %v2675_v29  ;;  %v469_v24 = vrot.slane %v467_v13, 4  ;;  %v472_v17 = vrot.slane %v470_v63, 5  ;;  %v6484_v46 = vld [vmem:[%s8135_s1 + $0xe] sm:$0x3] }
  0x66   : > { %v460_v4 = vrot.slane %v459_v55, 4  ;;  %v455_v9 = vsel %vm6150_vm4, %v450_v2, %v454_v37  ;;  %v4931_v11 = vcombine.low %v2673_v62, %v2676_v60  ;;  %v478_v5 = vrot.slane %v476_v26, 5  ;;  %v209_v55 = vld [vmem:[%s6124_s24 + $0x8c] sm:$0x1] }
  0x67   : > { %v482_v25 = vrot.slane %v480_v47, 4  ;;  %v473_v0 = vor.u32 %v472_v17, %v469_v24  ;;  %v488_v36 = vrot.slane %v486_v15, 5  ;;  %v4915_v29 = vrot.slane %v6202_v30, 9 }
  0x68   : > { %v465_v14 = vsel %vm6150_vm4, %v460_v4, %v464_v57  ;;  %5454 = vmatmul.mubr.msk.bf16.vlgmr.msra.gmra.mrb[0].mxu0 %vm660_vm3, %v4931_v11  ;;  %v2679_v16 = vrot.slane %v6209_v45, 5  ;;  %v2682_v62 = vrot.slane %v6214_v52, 5  ;;  %v491_v41 = vshrl.u32 %v6473_v27, 16  ;;  %v6510_v11 = vld [vmem:[%s6124_s24 + $0x94] sm:$0xf] }
  0x69   : > { %v4695_v37 = vcombine.low %v455_v9, %v465_v14  ;;  %v483_v54 = vor.u32 %v482_v25, %v478_v5  ;;  %5486 = vmatpush3.bf16.msra.mxu0 %v6182_v1  ;;  %v474_v57 = vrot.slane %v473_v0, 4  ;;  %v494_v30 = vshll.u32 %v6473_v27, 16  ;;  %v6507_v9 = vld [vmem:[%s6124_s24 + $0x90] sm:$0xf] }
  0x6a   : > { %v500_v13 = vshll.u32 %v6476_v33, 16  ;;  %v2680_v45 = vsel %vm6416_vm7, %v4915_v29, %v2679_v16  ;;  %v2681_v2 = vrot.slane %v2679_v16, 4  ;;  %v504_v52 = vshrl.u32 %v6476_v33, 16  ;;  %5853 = vmatprep.subr.msk.bf16.mxu0 %vm709_vm0, %v6484_v46 }
  0x6b   : > { %5300 = vmatmul.mubr.msk.bf16.gmra.mrb[16].mxu1 %vm660_vm3, %v4695_v37  ;;  %v484_v63 = vrot.slane %v483_v54, 4  ;;  %v479_v1 = vsel %vm6150_vm4, %v474_v57, %v478_v5  ;;  %v493_v26 = vrot.slane %v491_v41, 4  ;;  %v496_v47 = vrot.slane %v494_v30, 5 }
  0x6c   : > { %v502_v15 = vrot.slane %v500_v13, 5  ;;  %v2683_v60 = vsel %vm6416_vm7, %v2681_v2, %v2682_v62  ;;  %v506_v24 = vrot.slane %v504_v52, 4  ;;  %v510_v17 = vshll.u32 %v209_v55, 16  ;;  %v6518_v62 = vld [vmem:[%s6124_s24 + $0x98] sm:$0x1] }
  0x6d   : > { %v489_v4 = vsel %vm6150_vm4, %v484_v63, %v488_v36  ;;  %v4932_v14 = vcombine.low %v2680_v45, %v2683_v60  ;;  %v497_v0 = vor.u32 %v496_v47, %v493_v26  ;;  %v4916_v5 = vrot.slane %v6232_v21, 9  ;;  %v6537_v60 = vld [vmem:[%s6124_s24 + $0xa0] sm:$0xf] }
  0x6e   : > { %v4696_v25 = vcombine.low %v479_v1, %v489_v4  ;;  %v507_v29 = vor.u32 %v506_v24, %v502_v15  ;;  %v512_v37 = vrot.slane %v510_v17, 5  ;;  %v2686_v54 = vrot.slane %v6238_v34, 5  ;;  %v6534_v4 = vld [vmem:[%s6124_s24 + $0x9c] sm:$0xf] }
  0x6f   : > { %v2689_v36 = vrot.slane %v6247_v42, 5  ;;  %5457 = vmatprep.mubr.msk.bf16.mxu0 %vm660_vm3, %v4932_v14  ;;  %v498_v16 = vrot.slane %v497_v0, 4  ;;  %v515_v57 = vshrl.u32 %v6507_v9, 16  ;;  %v518_v55 = vshll.u32 %v6507_v9, 16 }
  0x70   : > { %5303 = vmatprep.mubr.msk.bf16.mxu1 %vm660_vm3, %v4696_v25  ;;  %v524_v21 = vshll.u32 %v6510_v11, 16  ;;  %v508_v41 = vrot.slane %v507_v29, 4  ;;  %v2687_v34 = vsel %vm6416_vm7, %v4916_v5, %v2686_v54  ;;  %v2688_v42 = vrot.slane %v2686_v54, 4  ;;  %v215_v54 = vld [vmem:[%s6124_s24 + $0xa4] sm:$0x1] }
  0x71   : > { %v528_v30 = vshrl.u32 %v6510_v11, 16  ;;  %v503_v13 = vsel %vm6150_vm4, %v498_v16, %v502_v15  ;;  %v517_v63 = vrot.slane %v515_v57, 4  ;;  %v520_v45 = vrot.slane %v518_v55, 5 }
  0x72   : > { %v526_v2 = vrot.slane %v524_v21, 5  ;;  %v513_v52 = vsel %vm6150_vm4, %v508_v41, %v512_v37  ;;  %v2690_v1 = vsel %vm6416_vm7, %v2688_v42, %v2689_v36  ;;  %v534_v47 = vshll.u32 %v6518_v62, 16 }
  0x73   : > { %v530_v26 = vrot.slane %v528_v30, 4  ;;  %v4697_v24 = vcombine.low %v503_v13, %v513_v52  ;;  %v4933_v17 = vcombine.low %v2687_v34, %v2690_v1  ;;  %v521_v15 = vor.u32 %v520_v45, %v517_v63  ;;  %v6558_v52 = vld [vmem:[%s6124_s24 + $0xa8] sm:$0xf]  ;;  %v6561_v1 = vld [vmem:[%s6124_s24 + $0xac] sm:$0xf] }
  0x74   : > { %v4917_v25 = vrot.slane %v6269_v10, 9  ;;  %v536_v0 = vrot.slane %v534_v47, 5  ;;  %v2693_v5 = vrot.slane %v6275_v19, 5  ;;  %v2696_v29 = vrot.slane %v6280_v31, 5  ;;  %8164 = vst [vmem:[#allocation3_spill] sm:$0xff] %v6558_v52 }
  0x75   : > { %v531_v14 = vor.u32 %v530_v26, %v526_v2  ;;  %5304 = vmatmul.mubr.msk.bf16.gmra.mrb[20].mxu1 %vm660_vm3, %v4697_v24  ;;  %5458 = vmatmul.mubr.msk.bf16.gmra.mrb[4].mxu0 %vm660_vm3, %v4933_v17  ;;  %v522_v37 = vrot.slane %v521_v15, 4  ;;  %v539_v36 = vshrl.u32 %v6534_v4, 16  ;;  %v542_v16 = vshll.u32 %v6534_v4, 16 }
  0x76   : > { %v548_v10 = vshll.u32 %v6537_v60, 16  ;;  %v2694_v19 = vsel %vm6416_vm7, %v4917_v25, %v2693_v5  ;;  %v2695_v55 = vrot.slane %v2693_v5, 4  ;;  %v552_v31 = vshrl.u32 %v6537_v60, 16  ;;  %v6569_v5 = vld [vmem:[%s6124_s24 + $0xb0] sm:$0x1] }
  0x77   : > { %v532_v57 = vrot.slane %v531_v14, 4  ;;  %v527_v21 = vsel %vm6150_vm4, %v522_v37, %v526_v2  ;;  %v541_v41 = vrot.slane %v539_v36, 4  ;;  %v544_v34 = vrot.slane %v542_v16, 5  ;;  %8165 = vst [vmem:[#allocation4_spill] sm:$0xff] %v6569_v5 }
  0x78   : > { %v550_v42 = vrot.slane %v548_v10, 5  ;;  %v2697_v13 = vsel %vm6416_vm7, %v2695_v55, %v2696_v29  ;;  %v554_v63 = vrot.slane %v552_v31, 4  ;;  %v558_v45 = vshll.u32 %v215_v54, 16 }
  0x79   : > { %v537_v30 = vsel %vm6150_vm4, %v532_v57, %v536_v0  ;;  %v4934_v47 = vcombine.low %v2694_v19, %v2697_v13  ;;  %v545_v24 = vor.u32 %v544_v34, %v541_v41  ;;  %v4918_v2 = vrot.slane %v6307_v8, 9  ;;  %v6585_v34 = vld [vmem:[%s6124_s24 + $0xb4] sm:$0xf] }
  0x7a   : > { %v4698_v26 = vcombine.low %v527_v21, %v537_v30  ;;  %v555_v17 = vor.u32 %v554_v63, %v550_v42  ;;  %v560_v15 = vrot.slane %v558_v45, 5  ;;  %v2700_v25 = vrot.slane %v6310_v18, 5  ;;  %8166 = vst [vmem:[#allocation5_spill] sm:$0xff] %v6585_v34  ;;  %v6588_v30 = vld [vmem:[%s6124_s24 + $0xb8] sm:$0xf] }
  0x7b   : > { %v2703_v14 = vrot.slane %v6316_v28, 5  ;;  %5461 = vmatprep.mubr.msk.bf16.mxu0 %vm660_vm3, %v4934_v47  ;;  %v546_v0 = vrot.slane %v545_v24, 4  ;;  %v563_v29 = vshrl.u32 %v6558_v52, 16  ;;  %v566_v37 = vshll.u32 %v6558_v52, 16  ;;  %8167 = vst [vmem:[#allocation6_spill] sm:$0xff] %v6588_v30 }
  0x7c   : > { %5307 = vmatprep.mubr.msk.bf16.mxu1 %vm660_vm3, %v4698_v26  ;;  %v572_v8 = vshll.u32 %v6561_v1, 16  ;;  %v556_v54 = vrot.slane %v555_v17, 4  ;;  %v2701_v18 = vsel %vm6416_vm7, %v4918_v2, %v2700_v25  ;;  %v2702_v28 = vrot.slane %v2700_v25, 4 }
  0x7d   : > { %v576_v36 = vshrl.u32 %v6561_v1, 16  ;;  %v551_v16 = vsel %vm6150_vm4, %v546_v0, %v550_v42  ;;  %v565_v10 = vrot.slane %v563_v29, 4  ;;  %v568_v57 = vrot.slane %v566_v37, 5 }
  0x7e   : > { %v574_v19 = vrot.slane %v572_v8, 5  ;;  %v561_v55 = vsel %vm6150_vm4, %v556_v54, %v560_v15  ;;  %v2704_v31 = vsel %vm6416_vm7, %v2702_v28, %v2703_v14  ;;  %v582_v41 = vshll.u32 %v6569_v5, 16  ;;  %v6596_v15 = vld [vmem:[%s6124_s24 + $0xbc] sm:$0x1]  ;;  %v4823_v28 = vld [vmem:[%s6124_s24 + $0x6c] sm:$0xf] }
  0x7f   : > { %v578_v21 = vrot.slane %v576_v36, 4  ;;  %v4699_v13 = vcombine.low %v551_v16, %v561_v55  ;;  %v4935_v63 = vcombine.low %v2701_v18, %v2704_v31  ;;  %v569_v42 = vor.u32 %v568_v57, %v565_v10  ;;  %8168 = vst [vmem:[#allocation7_spill] sm:$0xff] %v6596_v15  ;;  %v4824_v55 = vld [vmem:[%s6124_s24 + $0x70] sm:$0xf]  ;;  %v4825_v31 = vld [vmem:[%s6124_s24 + $0x74] sm:$0x1] }
  0x80   : > { %v4919_v45 = vrot.slane %v6341_v7, 9  ;;  %v584_v47 = vrot.slane %v582_v41, 5  ;;  %v2707_v24 = vrot.slane %v6344_v20, 5  ;;  %v2710_v2 = vrot.slane %v6351_v35, 5  ;;  %v5953_v5 = vld [vmem:[%s6124_s24 + $0x64] sm:$0xf] }
  0x81   : > { %v579_v26 = vor.u32 %v578_v21, %v574_v19  ;;  %5308 = vmatmul.mubr.msk.bf16.gmra.mrb[24].mxu1 %vm660_vm3, %v4699_v13  ;;  %5462 = vmatmul.mubr.msk.bf16.gmra.mrb[8].mxu0 %vm660_vm3, %v4935_v63  ;;  %v570_v17 = vrot.slane %v569_v42, 4  ;;  %v587_v25 = vshrl.u32 %v6585_v34, 16  ;;  %v590_v14 = vshll.u32 %v6585_v34, 16 }
  0x82   : > { %v596_v7 = vshll.u32 %v6588_v30, 16  ;;  %v2708_v20 = vsel %vm6416_vm7, %v4919_v45, %v2707_v24  ;;  %v2709_v35 = vrot.slane %v2707_v24, 4  ;;  %v600_v29 = vshrl.u32 %v6588_v30, 16 }
  0x83   : > { %v580_v0 = vrot.slane %v579_v26, 4  ;;  %v575_v37 = vsel %vm6150_vm4, %v570_v17, %v574_v19  ;;  %v589_v8 = vrot.slane %v587_v25, 4  ;;  %v592_v54 = vrot.slane %v590_v14, 5 }
  0x84   : > { %v598_v18 = vrot.slane %v596_v7, 5  ;;  %v2711_v16 = vsel %vm6416_vm7, %v2709_v35, %v2710_v2  ;;  %v602_v10 = vrot.slane %v600_v29, 4  ;;  %v606_v57 = vshll.u32 %v6596_v15, 16  ;;  %v6630_v35 = vld [vmem:[%s6124_s24] sm:$0xf] }
  0x85   : > { %v585_v36 = vsel %vm6150_vm4, %v580_v0, %v584_v47  ;;  %v4936_v41 = vcombine.low %v2708_v20, %v2711_v16  ;;  %v593_v13 = vor.u32 %v592_v54, %v589_v8  ;;  %v4920_v19 = vrot.slane %v6375_v23, 9  ;;  %v6633_v29 = vld [vmem:[%s6124_s24 + $0x4] sm:$0xf]  ;;  %v4826_v8 = vld [vmem:[%s6124_s24 + $0x78] sm:$0xf] }
  0x86   : > { %v4700_v21 = vcombine.low %v575_v37, %v585_v36  ;;  %v603_v63 = vor.u32 %v602_v10, %v598_v18  ;;  %v608_v42 = vrot.slane %v606_v57, 5  ;;  %v2714_v45 = vrot.slane %v6380_v39, 5  ;;  %v4827_v54 = vld [vmem:[%s6124_s24 + $0x7c] sm:$0xf]  ;;  %v4828_v16 = vld [vmem:[%s6124_s24 + $0x80] sm:$0x1] }
  0x87   : > { %v2717_v26 = vrot.slane %v6385_v59, 5  ;;  %5465 = vmatprep.mubr.msk.bf16.mxu0 %vm660_vm3, %v4936_v41  ;;  %v594_v47 = vrot.slane %v593_v13, 4  ;;  %v4921_v24 = vrot.slane %v4823_v28, 9  ;;  %v2721_v2 = vrot.slane %v4824_v55, 5  ;;  %v4829_v10 = vld [vmem:[%s6124_s24 + $0x84] sm:$0xf] }
  0x88   : > { %5311 = vmatprep.mubr.msk.bf16.mxu1 %vm660_vm3, %v4700_v21  ;;  %v2724_v17 = vrot.slane %v4825_v31, 5  ;;  %v604_v25 = vrot.slane %v603_v63, 4  ;;  %v2715_v23 = vsel %vm6416_vm7, %v4920_v19, %v2714_v45  ;;  %v2716_v39 = vrot.slane %v2714_v45, 4  ;;  %v4830_v55 = vld [vmem:[%s6124_s24 + $0x88] sm:$0xf] }
  0x89   : > { %v599_v59 = vsel %vm6150_vm4, %v594_v47, %v598_v18  ;;  %v2722_v14 = vsel %vm6416_vm7, %v4921_v24, %v2721_v2  ;;  %v2723_v7 = vrot.slane %v2721_v2, 4  ;;  %v4718_v37 = vcombine.low %v6630_v35, %v6633_v29  ;;  %v4831_v41 = vld [vmem:[%s6124_s24 + $0x8c] sm:$0x1]  ;;  %v4833_v13 = vld [vmem:[%s6124_s24 + $0x94] sm:$0xf] }
  0x8a   : > { %v609_v0 = vsel %vm6150_vm4, %v604_v25, %v608_v42  ;;  %v2718_v20 = vsel %vm6416_vm7, %v2716_v39, %v2717_v26  ;;  %v4922_v31 = vrot.slane %v4826_v8, 9  ;;  %v2728_v21 = vrot.slane %v4827_v54, 5  ;;  %v4832_v42 = vld [vmem:[%s6124_s24 + $0x90] sm:$0xf]  ;;  %v4834_v45 = vld [vmem:[%s6124_s24 + $0x98] sm:$0x1] }
  0x8b   : > { %v4701_v18 = vcombine.low %v599_v59, %v609_v0  ;;  %v4937_v28 = vcombine.low %v2715_v23, %v2718_v20  ;;  %v2725_v36 = vsel %vm6416_vm7, %v2723_v7, %v2724_v17  ;;  %v2731_v19 = vrot.slane %v4828_v16, 5  ;;  %v4835_v2 = vld [vmem:[%s6124_s24 + $0x9c] sm:$0xf]  ;;  %v4836_v17 = vld [vmem:[%s6124_s24 + $0xa0] sm:$0xf] }
  0x8c   : > { %v4938_v57 = vcombine.low %v2722_v14, %v2725_v36  ;;  %v4923_v63 = vrot.slane %v4829_v10, 9  ;;  %v2729_v26 = vsel %vm6416_vm7, %v4922_v31, %v2728_v21  ;;  %v2730_v47 = vrot.slane %v2728_v21, 4  ;;  %v6657_v25 = vld [vmem:[%s6124_s24 + $0xc] sm:$0xf]  ;;  %v6660_v23 = vld [vmem:[%s6124_s24 + $0x10] sm:$0xf] }
  0x8d   : > { %5312 = vmatmul.mubr.msk.bf16.gmra.mrb[28].mxu1 %vm660_vm3, %v4701_v18  ;;  %5466 = vmatmul.mubr.msk.bf16.gmra.mrb[12].mxu0 %vm660_vm3, %v4937_v28  ;;  %v2735_v24 = vrot.slane %v4830_v55, 5  ;;  %v4719_v39 = vcombine.low %v6657_v25, %v6660_v23  ;;  %v5932_v59 = vld [vmem:[%s8135_s1 + $0x4] sm:$0x3]  ;;  %v2738_v7 = vrot.slane %v4831_v41, 5  ;;  %v2742_v0 = vrot.slane %v4833_v13, 5 }
  0x8e   : > { %5317 = vmatprep.mubr.msk.bf16.mxu1 %vm660_vm3, %v4718_v37  ;;  %5469 = vmatprep.mubr.msk.bf16.mxu0 %vm660_vm3, %v4938_v57  ;;  %v1396_v14 = vsel %vm709_vm0, %v5932_v59, 0  ;;  %v4837_v20 = vld [vmem:[%s6124_s24 + $0xa4] sm:$0x1]  ;;  %v2732_v37 = vsel %vm6416_vm7, %v2730_v47, %v2731_v19  ;;  %v6672_v8 = vld [vmem:[%s6124_s24 + $0x18] sm:$0xf]  ;;  %v4924_v10 = vrot.slane %v4832_v42, 9 }
  0x8f   : > { %v6675_v54 = vld [vmem:[%s6124_s24 + $0x1c] sm:$0xf]  ;;  %v2736_v28 = vsel %vm6416_vm7, %v4923_v63, %v2735_v24  ;;  %v2737_v36 = vrot.slane %v2735_v24, 4  ;;  %v4939_v16 = vcombine.low %v2729_v26, %v2732_v37  ;;  %v2744_v57 = vrot.slane %v2742_v0, 4  ;;  %v4839_v19 = vld [vmem:[%s6124_s24 + $0xac] sm:$0xf] }
  0x90   : > { %v4720_v18 = vcombine.low %v6672_v8, %v6675_v54  ;;  %v2745_v55 = vrot.slane %v4834_v45, 5  ;;  %v4925_v21 = vrot.slane %v4835_v2, 9  ;;  %v2749_v41 = vrot.slane %v4836_v17, 5  ;;  %v4842_v59 = vld [vmem:[%s6124_s24 + $0xb8] sm:$0xf] }
  0x91   : > { %v2739_v31 = vsel %vm6416_vm7, %v2737_v36, %v2738_v7  ;;  %v2752_v13 = vrot.slane %v4837_v20, 5  ;;  %v6688_v63 = vld [vmem:[%s8135_s1 + $0x6] sm:$0x3]  ;;  %v2743_v45 = vsel %vm6416_vm7, %v4924_v10, %v2742_v0  ;;  %v2756_v24 = vrot.slane %v4839_v19, 5  ;;  %v4840_v7 = vld [vmem:[%s6124_s24 + $0xb0] sm:$0x1] }
  0x92   : > { %v4940_v47 = vcombine.low %v2736_v28, %v2739_v31  ;;  %v2751_v42 = vrot.slane %v2749_v41, 4  ;;  %v2746_v26 = vsel %vm6416_vm7, %v2744_v57, %v2745_v55  ;;  %v2750_v2 = vsel %vm6416_vm7, %v4925_v21, %v2749_v41  ;;  %v4841_v0 = vld [vmem:[%s6124_s24 + $0xb4] sm:$0xf]  ;;  %v4843_v20 = vld [vmem:[%s6124_s24 + $0xbc] sm:$0x1] }
  0x93   : > { %v6709_v37 = vld [vmem:[%s6124_s24 + $0x24] sm:$0xf]  ;;  %v4941_v36 = vcombine.low %v2743_v45, %v2746_v26  ;;  %v2758_v55 = vrot.slane %v2756_v24, 4  ;;  %v2759_v31 = vrot.slane %v4840_v7, 5  ;;  %v4927_v21 = vrot.slane %v4841_v0, 9 }
  0x94   : > { %v2753_v17 = vsel %vm6416_vm7, %v2751_v42, %v2752_v13  ;;  %v2766_v13 = vrot.slane %v4843_v20, 5  ;;  %v4845_v19 = vld [vmem:[%s6124_s24 + $0xc4] sm:$0xf]  ;;  %v4844_v45 = vld [vmem:[%s6124_s24 + $0xc0] sm:$0xf] }
  0x95   : > { %5318 = vmatmul.mubr.msk.bf16.vlgmr.msra.gmra.mrb[0].mxu1 %vm660_vm3, %v4719_v39  ;;  %5470 = vmatmul.mubr.msk.bf16.gmra.mrb[16].mxu0 %vm660_vm3, %v4939_v16  ;;  %v4838_v39 = vld [vmem:[%s6124_s24 + $0xa8] sm:$0xf]  ;;  %v4722_v16 = vcombine.low %v6251_v44, %v6257_v56  ;;  %v4942_v10 = vcombine.low %v2750_v2, %v2753_v17  ;;  %v2760_v56 = vsel %vm6416_vm7, %v2758_v55, %v2759_v31  ;;  %v4928_v7 = vrot.slane %v4844_v45, 9 }
  0x96   : > { %5350 = vmatpush3.bf16.msra.mxu1 %v1396_v14  ;;  %5321 = vmatprep.mubr.msk.bf16.mxu1 %vm660_vm3, %v4720_v18  ;;  %v2763_v14 = vrot.slane %v4842_v59, 5  ;;  %v6712_v18 = vld [vmem:[%s6124_s24 + $0x28] sm:$0xf]  ;;  %v4926_v57 = vrot.slane %v4838_v39, 9  ;;  %v4723_v2 = vcombine.low %v6288_v50, %v6294_v51  ;;  %v4728_v55 = vcombine.low %v6446_v58, %v6451_v43  ;;  %v6795_v58 = vld [vmem:[%s6124_s24 + $0x40] sm:$0xf] }
  0x97   : > { %5473 = vmatprep.mubr.msk.bf16.mxu0 %vm660_vm3, %v4940_v47  ;;  %5848 = vmatprep.subr.msk.bf16.mxu1 %vm709_vm0, %v6688_v63  ;;  %v4721_v28 = vcombine.low %v6709_v37, %v6712_v18  ;;  %v2770_v47 = vrot.slane %v4845_v19, 5  ;;  %v4846_v26 = vld [vmem:[%s6124_s24 + $0xc8] sm:$0x1]  ;;  %v3930_v31 = vsel %vm709_vm0, %v6484_v46, 0  ;;  %v4729_v45 = vcombine.low %v6473_v27, %v6476_v33 }
  0x98   : > { %v2765_v41 = vrot.slane %v2763_v14, 4  ;;  %v2757_v44 = vsel %vm6416_vm7, %v4926_v57, %v2756_v24  ;;  %v2764_v59 = vsel %vm6416_vm7, %v4927_v21, %v2763_v14  ;;  %v4724_v24 = vcombine.low %v6324_v40, %v6327_v48  ;;  %v6746_v40 = vld [vmem:[%s6124_s24 + $0x18] sm:$0xf]  ;;  %v6749_v48 = vld [vmem:[%s6124_s24 + $0x1c] sm:$0xf] }
  0x99   : > { %v4943_v17 = vcombine.low %v2757_v44, %v2760_v56  ;;  %v2772_v0 = vrot.slane %v2770_v47, 4  ;;  %v2773_v20 = vrot.slane %v4846_v26, 5  ;;  %v2771_v50 = vsel %vm6416_vm7, %v4928_v7, %v2770_v47  ;;  %v6799_v46 = vld [vmem:[%s6124_s24 + $0x48] sm:$0xf]  ;;  %v6812_v47 = vld [vmem:[%s6124_s24 + $0x14] sm:$0x1] }
  0x9a   : > { %v2767_v42 = vsel %vm6416_vm7, %v2765_v41, %v2766_v13  ;;  %v4725_v14 = vcombine.low %v6358_v53, %v6364_v61  ;;  %v6765_v53 = vld [vmem:[%s6124_s24 + $0x28] sm:$0xf]  ;;  %v6768_v61 = vld [vmem:[%s6124_s24 + $0x30] sm:$0xf]  ;;  %v6802_v13 = vld [vmem:[%s6124_s24 + $0x4c] sm:$0xf] }
  0x9b   : > { %v4944_v39 = vcombine.low %v2764_v59, %v2767_v42  ;;  %v2774_v51 = vsel %vm6416_vm7, %v2772_v0, %v2773_v20  ;;  %v6786_v41 = vld [vmem:[%s8135_s1 + $0x10] sm:$0x3]  ;;  %v6807_v19 = vld [vmem:[%s6124_s24 + $0x8] sm:$0x1]  ;;  %v1194_v56 = vrot.slane %v6660_v23, 5  ;;  %v1197_v59 = vrot.slane %v6812_v47, 5 }
  0x9c   : > { %v1190_v44 = vrot.slane %v6807_v19, 5  ;;  %v4730_v23 = vcombine.low %v6507_v9, %v6510_v11  ;;  %v6830_v7 = vld [vmem:[%s6124_s24 + $0x58] sm:$0xf]  ;;  %v1201_v9 = vrot.slane %v6675_v54, 5  ;;  %v6899_v33 = vld [vmem:[%s6124_s24 + $0x88] sm:$0xf] }
  0x9d   : > { %5322 = vmatmul.mubr.msk.bf16.gmra.mrb[4].mxu1 %vm660_vm3, %v4721_v28  ;;  %5474 = vmatmul.mubr.msk.bf16.gmra.mrb[20].mxu0 %vm660_vm3, %v4941_v36  ;;  %v4945_v28 = vcombine.low %v2771_v50, %v2774_v51  ;;  %v4726_v36 = vcombine.low %v6395_v6, %v6398_v22  ;;  %v6771_v6 = vld [vmem:[%s6124_s24 + $0x34] sm:$0xf]  ;;  %v4727_v22 = vcombine.low %v6412_v49, %v6428_v38  ;;  %v6792_v49 = vld [vmem:[%s6124_s24 + $0x3c] sm:$0xf]  ;;  %v6837_v50 = vld [vmem:[%s6124_s24 + $0x60] sm:$0xf] }
  0x9e   : > { %5325 = vmatprep.mubr.msk.bf16.mxu1 %vm660_vm3, %v4722_v16  ;;  %5477 = vmatprep.mubr.msk.bf16.mxu0 %vm660_vm3, %v4942_v10  ;;  %v5011_v16 = vcombine.low %v6746_v40, %v6749_v48  ;;  %v6762_v10 = vld [vmem:[%s6124_s24 + $0x24] sm:$0xf]  ;;  %v5013_v21 = vcombine.low %v6768_v61, %v6771_v6  ;;  %v5014_v26 = vcombine.low %v6792_v49, %v6795_v58  ;;  %v4752_v27 = vrot.slane %v6672_v8, 9  ;;  %v6923_v0 = vld [vmem:[%s6124_s24 + $0x94] sm:$0xf] }
  0x9f   : > { %v5012_v57 = vcombine.low %v6762_v10, %v6765_v53  ;;  %8169 = vst [vmem:[#allocation8_spill] sm:$0xff] %v6837_v50  ;;  %v4733_v51 = vcombine.low %v6585_v34, %v6588_v30  ;;  %v6931_v19 = vsel %vm709_vm0, %v6688_v63, 0  ;;  %v6949_v8 = vld [vmem:[%s6124_s24 + $0x9c] sm:$0xf]  ;;  %v6961_v54 = vld [vmem:[%s6124_s24 + $0xa8] sm:$0xf] }
  0xa0   : > { %v5944_v42 = vld [vmem:[%s6124_s24 + $0x40] sm:$0xf]  ;;  %v7030_v34 = vld [vmem:[%s6124_s24 + $0xc4] sm:$0xf] }
  0xa5   : > { %5326 = vmatmul.mubr.msk.bf16.gmra.mrb[8].mxu1 %vm660_vm3, %v4723_v2  ;;  %5478 = vmatmul.mubr.msk.bf16.gmra.mrb[24].mxu0 %vm660_vm3, %v4943_v17  ;;  %v6913_v17 = vld [vmem:[%s6124_s24 + $0x90] sm:$0xf]  ;;  %v6966_v2 = vld [vmem:[%s6124_s24 + $0xac] sm:$0xf] }
  0xa6   : > { %5329 = vmatprep.mubr.msk.bf16.mxu1 %vm660_vm3, %v4724_v24  ;;  %5481 = vmatprep.mubr.msk.bf16.mxu0 %vm660_vm3, %v4944_v39  ;;  %v5015_v24 = vcombine.low %v6799_v46, %v6802_v13  ;;  %v6827_v39 = vld [vmem:[%s6124_s24 + $0x54] sm:$0xf]  ;;  %8175 = vst [vmem:[#allocation14_spill] sm:$0xff] %v6913_v17 }
  0xa7   : > { %v5016_v47 = vcombine.low %v6827_v39, %v6830_v7 }
  0xad   : > { %5330 = vmatmul.mubr.msk.bf16.gmra.mrb[12].mxu1 %vm660_vm3, %v4725_v14  ;;  %5482 = vmatmul.mubr.msk.bf16.gmra.mrb[28].mxu0 %vm660_vm3, %v4945_v28  ;;  %v1222_v28 = vrot.slane %v5944_v42, 5  ;;  %v5945_v42 = vld [vmem:[%s6124_s24 + $0x4c] sm:$0xf] }
  0xae   : > { %5333 = vmatprep.mubr.msk.bf16.mxu1 %vm660_vm3, %v4726_v36  ;;  %5487 = vmatprep.mubr.msk.bf16.mxu0 %vm660_vm3, %v5011_v16  ;;  %v6844_v36 = vld [vmem:[%s6124_s24 + $0x64] sm:$0xf] }
  0xb5   : > { %5334 = vmatmul.mubr.msk.bf16.gmra.mrb[16].mxu1 %vm660_vm3, %v4727_v22  ;;  %5488 = vmatmul.mubr.msk.bf16.vlgmr.msra.gmra.mrb[0].mxu0 %vm660_vm3, %v5012_v57  ;;  %v6878_v22 = vld [vmem:[%s6124_s24 + $0x7c] sm:$0xf]  ;;  %v1196_v57 = vrot.slane %v1194_v56, 4 }
  0xb6   : > { %5520 = vmatpush3.bf16.msra.mxu0 %v3930_v31  ;;  %5337 = vmatprep.mubr.msk.bf16.mxu1 %vm660_vm3, %v4728_v55  ;;  %v1187_v55 = vrot.slane %v6633_v29, 5  ;;  %v6870_v31 = vld [vmem:[%s6124_s24 + $0x70] sm:$0xf]  ;;  %8173 = vst [vmem:[#allocation12_spill] sm:$0xff] %v6878_v22  ;;  %v4751_v29 = vrot.slane %v6657_v25, 9 }
  0xb7   : > { %5491 = vmatprep.mubr.msk.bf16.mxu0 %vm660_vm3, %v5013_v21  ;;  %5854 = vmatprep.subr.msk.bf16.mxu0 %vm709_vm0, %v6786_v41  ;;  %v4731_v21 = vcombine.low %v6534_v4, %v6537_v60  ;;  %8171 = vst [vmem:[#allocation10_spill] sm:$0xff] %v6870_v31  ;;  %v6873_v4 = vld [vmem:[%s6124_s24 + $0x78] sm:$0xf]  ;;  %v6891_v25 = vld [vmem:[%s6124_s24 + $0x84] sm:$0xf]  ;;  %v6909_v16 = vsel %vm6416_vm7, %v1196_v57, %v1197_v59  ;;  %v1208_v59 = vrot.slane %v6712_v18, 5 }
  0xb8   : > { %8172 = vst [vmem:[#allocation11_spill] sm:$0xff] %v6873_v4  ;;  %v1189_v14 = vrot.slane %v1187_v55, 4  ;;  %8174 = vst [vmem:[#allocation13_spill] sm:$0xff] %v6891_v25  ;;  %v6905_v20 = vsel %vm6416_vm7, %v4751_v29, %v1194_v56  ;;  %v1203_v56 = vrot.slane %v1201_v9, 4  ;;  %v5943_v18 = vld [vmem:[%s6124_s24 + $0x38] sm:$0x1] }
  0xbd   : > { %5338 = vmatmul.mubr.msk.bf16.gmra.mrb[20].mxu1 %vm660_vm3, %v4729_v45  ;;  %5492 = vmatmul.mubr.msk.bf16.gmra.mrb[4].mxu0 %vm660_vm3, %v5014_v26  ;;  %v6861_v26 = vld [vmem:[%s6124_s24 + $0x6c] sm:$0xf]  ;;  %v4750_v45 = vrot.slane %v6630_v35, 9 }
  0xbe   : > { %5341 = vmatprep.mubr.msk.bf16.mxu1 %vm660_vm3, %v4730_v23  ;;  %5495 = vmatprep.mubr.msk.bf16.mxu0 %vm660_vm3, %v5015_v24  ;;  %8170 = vst [vmem:[#allocation9_spill] sm:$0xff] %v6861_v26  ;;  %v4732_v23 = vcombine.low %v6558_v52, %v6561_v1  ;;  %v5017_v24 = vcombine.low %v6837_v50, %v6844_v36  ;;  %v8178_v52 = vshll.u32 %v6746_v40, 16 }
  0xbf   : > { %v5018_v35 = vcombine.low %v6861_v26, %v6870_v31  ;;  %v1188_v60 = vsel %vm6416_vm7, %v4750_v45, %v1187_v55  ;;  %v1191_v55 = vsel %vm6416_vm7, %v1189_v14, %v1190_v44  ;;  %v5939_v45 = vld [vmem:[%s6124_s24 + $0x20] sm:$0x1]  ;;  %v5940_v14 = vld [vmem:[%s6124_s24 + $0x34] sm:$0xf]  ;;  %v1243_v31 = vrot.slane %v5953_v5, 5 }
  0xc0   : > { %v1204_v29 = vrot.slane %v5939_v45, 5  ;;  %v1215_v57 = vrot.slane %v5940_v14, 5  ;;  %v4767_v63 = vcombine.low %v1188_v60, %v1191_v55  ;;  %v4753_v14 = vrot.slane %v6709_v37, 9  ;;  %v5941_v55 = vld [vmem:[%s6124_s24 + $0x2c] sm:$0x1] }
  0xc1   : > { %v1210_v60 = vrot.slane %v1208_v59, 4  ;;  %v1218_v37 = vrot.slane %v5943_v18, 5  ;;  %v5948_v45 = vld [vmem:[%s6124_s24 + $0x58] sm:$0xf]  ;;  %v5951_v26 = vld [vmem:[%s6124_s24 + $0x54] sm:$0xf] }
  0xc2   : > { %v1217_v44 = vrot.slane %v1215_v57, 4  ;;  %v6978_v18 = vsel %vm6416_vm7, %v4753_v14, %v1208_v59  ;;  %v6995_v14 = vld [vmem:[%s6124_s24 + $0xb4] sm:$0xf]  ;;  %v4757_v30 = vrot.slane %v5951_v26, 9  ;;  %v8179_v5 = vshrl.u32 %v6749_v48, 16 }
  0xc5   : > { %5342 = vmatmul.mubr.msk.bf16.gmra.mrb[24].mxu1 %vm660_vm3, %v4731_v21  ;;  %5496 = vmatmul.mubr.msk.bf16.gmra.mrb[8].mxu0 %vm660_vm3, %v5016_v47  ;;  %v6952_v21 = vld [vmem:[%s6124_s24 + $0xa0] sm:$0xf]  ;;  %v1211_v47 = vrot.slane %v5941_v55, 5 }
  0xc6   : > { %5345 = vmatprep.mubr.msk.bf16.mxu1 %vm660_vm3, %v4732_v23  ;;  %5499 = vmatprep.mubr.msk.bf16.mxu0 %vm660_vm3, %v5017_v24  ;;  %v6943_v24 = vsel %vm6416_vm7, %v4752_v27, %v1201_v9  ;;  %v6956_v23 = vsel %vm6416_vm7, %v1203_v56, %v1204_v29  ;;  %v5942_v27 = vld [vmem:[%s6124_s24 + $0x30] sm:$0xf]  ;;  %v5947_v56 = vld [vmem:[%s6124_s24 + $0x44] sm:$0x1] }
  0xc7   : > { %v4754_v9 = vrot.slane %v5942_v27, 9  ;;  %v6986_v27 = vsel %vm6416_vm7, %v1210_v60, %v1211_v47  ;;  %v5946_v47 = vld [vmem:[%s6124_s24 + $0x3c] sm:$0xf]  ;;  %v1225_v59 = vrot.slane %v5947_v56, 5  ;;  %v7022_v56 = vld [vmem:[%s6124_s24 + $0xc0] sm:$0xf] }
  0xc8   : > { %v4755_v60 = vrot.slane %v5946_v47, 9  ;;  %v5949_v47 = vld [vmem:[%s6124_s24 + $0x48] sm:$0xf] }
  0xc9   : > { %v6990_v29 = vsel %vm6416_vm7, %v4754_v9, %v1215_v57  ;;  %v7008_v57 = vsel %vm6416_vm7, %v1217_v44, %v1218_v37  ;;  %v1224_v9 = vrot.slane %v1222_v28, 4  ;;  %v4756_v15 = vrot.slane %v5949_v47, 9 }
  0xca   : > { %v7034_v37 = vsel %vm6416_vm7, %v4755_v60, %v1222_v28  ;;  %v3453_v28 = vrot.slane %v8178_v52, 5  ;;  %v8181_v52 = vcombine.low %v6891_v25, %v6899_v33 }
  0xcb   : > { %v7038_v47 = vsel %vm6416_vm7, %v1224_v9, %v1225_v59  ;;  %v7054_v59 = vld [vmem:[%s6124_s24 + $0xcc] sm:$0xf]  ;;  %v3463_v9 = vrot.slane %v8179_v5, 4 }
  0xcd   : > { %5346 = vmatmul.mubr.msk.bf16.gmra.mrb[28].mxu1 %vm660_vm3, %v4733_v51  ;;  %5500 = vmatmul.mubr.msk.bf16.gmra.mrb[12].mxu0 %vm660_vm3, %v5018_v35  ;;  %v1229_v51 = vrot.slane %v5945_v42, 5  ;;  %v8176_v35 = vcombine.low %v6873_v4, %v6878_v22  ;;  %v3457_v42 = vshll.u32 %v6749_v48, 16  ;;  %v5950_v4 = vld [vmem:[%s6124_s24 + $0x50] sm:$0x1]  ;;  %v5952_v22 = vld [vmem:[%s6124_s24 + $0x5c] sm:$0x1] }
  0xce   : > { %5351 = vmatprep.mubr.msk.bf16.mxu1 %vm660_vm3, %v4767_v63  ;;  %v1232_v44 = vrot.slane %v5950_v4, 5  ;;  %v1239_v55 = vrot.slane %v5952_v22, 5  ;;  %v8177_v4 = vshrl.u32 %v6746_v40, 16  ;;  %v7075_v48 = vld [vmem:[%s6124_s24 + $0xd0] sm:$0xf] }
  0xcf   : > { %5503 = vmatprep.mubr.msk.bf16.mxu0 %vm660_vm3, %v8176_v35  ;;  %v1236_v35 = vrot.slane %v5948_v45, 5  ;;  %v1231_v45 = vrot.slane %v1229_v51, 4  ;;  %v7049_v60 = vsel %vm6416_vm7, %v4756_v15, %v1229_v51  ;;  %v7056_v22 = vrot.slane %v3457_v42, 5  ;;  %v7078_v51 = vld [vmem:[%s6124_s24 + $0x20] sm:$0x1] }
  0xd0   : > { %v3450_v50 = vrot.slane %v8177_v4, 4  ;;  %v8180_v4 = vcombine.low %v6905_v20, %v6909_v16  ;;  %8182 = vst [vmem:[#allocation15_spill] sm:$0xff] %v7078_v51  ;;  %v1250_v20 = vrot.slane %v6428_v38, 5  ;;  %v3481_v16 = vshll.u32 %v6765_v53, 16  ;;  %v5958_v15 = vld [vmem:[%s6124_s24 + $0x74] sm:$0x1] }
  0xd1   : > { %v1238_v63 = vrot.slane %v1236_v35, 4  ;;  %v7072_v40 = vsel %vm6416_vm7, %v1231_v45, %v1232_v44  ;;  %v8183_v42 = vcombine.low %v6943_v24, %v6956_v23  ;;  %v7089_v5 = vsel %vm6416_vm7, %v4757_v30, %v1236_v35  ;;  %v5954_v44 = vld [vmem:[%s6124_s24 + $0x60] sm:$0xf]  ;;  %v5955_v24 = vld [vmem:[%s6124_s24 + $0x68] sm:$0x1] }
  0xd2   : > { %v4758_v45 = vrot.slane %v5954_v44, 9  ;;  %v8185_v38 = vshll.u32 %v6762_v10, 16  ;;  %v1245_v23 = vrot.slane %v1243_v31, 4  ;;  %v1246_v35 = vrot.slane %v5955_v24, 5  ;;  %v7116_v24 = vld [vmem:[%s6124_s24 + $0x2c] sm:$0x1] }
  0xd3   : > { %v7102_v30 = vsel %vm6416_vm7, %v1238_v63, %v1239_v55  ;;  %v1252_v63 = vrot.slane %v1250_v20, 4 }
  0xd4   : > { %v3477_v26 = vrot.slane %v8185_v38, 5  ;;  %v3467_v38 = vshll.u32 %v7078_v51, 16  ;;  %v1257_v51 = vrot.slane %v6451_v43, 5 }
  0xd5   : > { %5352 = vmatmul.mubr.msk.bf16.vlgmr.msra.gmra.mrb[0].mxu1 %vm660_vm3, %v8180_v4  ;;  %5504 = vmatmul.mubr.msk.bf16.gmra.mrb[16].mxu0 %vm660_vm3, %v8181_v52  ;;  %v8184_v4 = vshrl.u32 %v6762_v10, 16  ;;  %v5956_v10 = vld [vmem:[%s8135_s1 + $0x8] sm:$0x3] }
  0xd6   : > { %5384 = vmatpush3.bf16.msra.mxu1 %v6931_v19  ;;  %5355 = vmatprep.mubr.msk.bf16.mxu1 %vm660_vm3, %v8183_v42  ;;  %v8186_v19 = vcombine.low %v6913_v17, %v6923_v0  ;;  %v3454_v42 = vor.u32 %v3453_v28, %v3450_v50  ;;  %v1253_v17 = vrot.slane %v5958_v15, 5  ;;  %v7118_v50 = vrot.slane %v3481_v16, 5 }
  0xd7   : > { %v3474_v52 = vrot.slane %v8184_v4, 4  ;;  %5850 = vmatprep.subr.msk.bf16.mxu1 %vm709_vm0, %v5956_v10  ;;  %v3464_v4 = vor.u32 %v3463_v9, %v7056_v22  ;;  %v8187_v28 = vshrl.u32 %v6765_v53, 16  ;;  %v4773_v10 = vcombine.low %v7049_v60, %v7072_v40  ;;  %v5964_v9 = vld [vmem:[%s6124_s24 + $0x90] sm:$0xf] }
  0xd8   : > { %5507 = vmatprep.mubr.msk.bf16.mxu0 %vm660_vm3, %v8186_v19  ;;  %v5957_v19 = vld [vmem:[%s6124_s24 + $0x6c] sm:$0xf]  ;;  %v7133_v15 = vsel %vm6416_vm7, %v1245_v23, %v1246_v35  ;;  %v7135_v53 = vrot.slane %v3454_v42, 4  ;;  %v3505_v16 = vshll.u32 %v6771_v6, 16  ;;  %v7140_v40 = vrot.slane %v3467_v38, 5 }
  0xd9   : > { %v4759_v55 = vrot.slane %v5957_v19, 9  ;;  %v3487_v25 = vrot.slane %v8187_v28, 4  ;;  %v3478_v44 = vor.u32 %v3477_v26, %v3474_v52  ;;  %v7129_v19 = vsel %vm6416_vm7, %v4758_v45, %v1243_v31  ;;  %v5959_v38 = vld [vmem:[%s6124_s24 + $0x78] sm:$0xf] }
  0xda   : > { %v7138_v60 = vrot.slane %v3464_v4, 4  ;;  %v3491_v31 = vshll.u32 %v7116_v24, 16  ;;  %v8188_v26 = vcombine.low %v6978_v18, %v6986_v27  ;;  %v8189_v45 = vcombine.low %v6949_v8, %v6952_v21 }
  0xdb   : > { %v7144_v43 = vsel %vm6416_vm7, %v4759_v55, %v1250_v20  ;;  %v7157_v52 = vsel %vm6416_vm7, %v1252_v63, %v1253_v17  ;;  %v3488_v20 = vor.u32 %v3487_v25, %v7118_v50  ;;  %v8190_v23 = vshrl.u32 %v6768_v61, 16  ;;  %v5960_v63 = vld [vmem:[%s6124_s24 + $0x80] sm:$0x1] }
  0xdc   : > { %v8191_v42 = vshll.u32 %v6768_v61, 16  ;;  %v8192_v27 = vcombine.low %v6990_v29, %v7008_v57  ;;  %v8193_v18 = vcombine.low %v6961_v54, %v6966_v2  ;;  %v3479_v17 = vrot.slane %v3478_v44, 4  ;;  %v7252_v61 = vld [vmem:[%s6124_s24 + $0x50] sm:$0x1] }
  0xdd   : > { %5356 = vmatmul.mubr.msk.bf16.gmra.mrb[4].mxu1 %vm660_vm3, %v8188_v26  ;;  %5508 = vmatmul.mubr.msk.bf16.gmra.mrb[20].mxu0 %vm660_vm3, %v8189_v45  ;;  %v3498_v35 = vrot.slane %v8190_v23, 4  ;;  %v4760_v55 = vrot.slane %v5959_v38, 9  ;;  %v1259_v25 = vrot.slane %v1257_v51, 4  ;;  %v1260_v28 = vrot.slane %v5960_v63, 5  ;;  %v7175_v26 = vld [vmem:[%s6124_s24 + $0x38] sm:$0x1] }
  0xde   : > { %v3501_v4 = vrot.slane %v8191_v42, 5  ;;  %5359 = vmatprep.mubr.msk.bf16.mxu1 %vm660_vm3, %v8192_v27  ;;  %5511 = vmatprep.mubr.msk.bf16.mxu0 %vm660_vm3, %v8193_v18  ;;  %8194 = vst [vmem:[#allocation16_spill] sm:$0xff] %v7175_v26  ;;  %v3460_v29 = vsel %vm6150_vm4, %v7135_v53, %v7056_v22  ;;  %v7183_v57 = vrot.slane %v3505_v16, 5  ;;  %v8195_v44 = vshrl.u32 %v6771_v6, 16 }
  0xdf   : > { %v3470_v23 = vsel %vm6150_vm4, %v7138_v60, %v7140_v40  ;;  %v7195_v27 = vsel %vm709_vm0, %v6786_v41, 0  ;;  %v3529_v22 = vshll.u32 %v6795_v58, 16  ;;  %v3489_v53 = vrot.slane %v3488_v20, 4 }
  0xe0   : > { %v3511_v45 = vrot.slane %v8195_v44, 4  ;;  %v3493_v16 = vrot.slane %v3491_v31, 5  ;;  %v3502_v6 = vor.u32 %v3501_v4, %v3498_v35  ;;  %v3515_v18 = vshll.u32 %v7175_v26, 16  ;;  %v5961_v31 = vld [vmem:[%s6124_s24 + $0x88] sm:$0xf] }
  0xe1   : > { %v3484_v60 = vsel %vm6150_vm4, %v3479_v17, %v7118_v50  ;;  %v7204_v40 = vsel %vm6416_vm7, %v4760_v55, %v1257_v51  ;;  %v7208_v41 = vsel %vm6416_vm7, %v1259_v25, %v1260_v28  ;;  %v3553_v38 = vshll.u32 %v6802_v13, 16  ;;  %v5962_v44 = vld [vmem:[%s6124_s24 + $0x84] sm:$0xf] }
  0xe2   : > { %v3512_v20 = vor.u32 %v3511_v45, %v7183_v57  ;;  %v1264_v35 = vrot.slane %v5961_v31, 5  ;;  %v8196_v4 = vshrl.u32 %v6792_v49, 16  ;;  %v8197_v50 = vshll.u32 %v6792_v49, 16  ;;  %v7219_v55 = vld [vmem:[%s6124_s24 + $0x44] sm:$0x1] }
  0xe3   : > { %v4761_v51 = vrot.slane %v5962_v44, 9  ;;  %v7221_v42 = vrot.slane %v3529_v22, 5  ;;  %v8198_v25 = vshrl.u32 %v6795_v58, 16  ;;  %v1271_v45 = vrot.slane %v6510_v11, 5 }
  0xe4   : > { %v3522_v63 = vrot.slane %v8196_v4, 4  ;;  %v3525_v17 = vrot.slane %v8197_v50, 5  ;;  %v8199_v31 = vcombine.low %v7034_v37, %v7038_v47  ;;  %v8200_v49 = vcombine.low %v6995_v14, %v6998_v3  ;;  %v5963_v50 = vld [vmem:[%s6124_s24 + $0x8c] sm:$0x1] }
  0xe5   : > { %v3535_v28 = vrot.slane %v8198_v25, 4  ;;  %v3494_v22 = vsel %vm6150_vm4, %v3489_v53, %v3493_v16  ;;  %v3503_v4 = vrot.slane %v3502_v6, 4  ;;  %v3517_v58 = vrot.slane %v3515_v18, 5 }
  0xe6   : > { %5360 = vmatmul.mubr.msk.bf16.gmra.mrb[8].mxu1 %vm660_vm3, %v8199_v31  ;;  %5512 = vmatmul.mubr.msk.bf16.gmra.mrb[24].mxu0 %vm660_vm3, %v8200_v49  ;;  %v1267_v44 = vrot.slane %v5963_v50, 5  ;;  %v8201_v11 = vcombine.low %v7022_v56, %v7030_v34  ;;  %v8202_v37 = vshrl.u32 %v6799_v46, 16  ;;  %v8203_v25 = vshll.u32 %v6799_v46, 16 }
  0xe7   : > { %5363 = vmatprep.mubr.msk.bf16.mxu1 %vm660_vm3, %v4773_v10  ;;  %v7246_v49 = vrot.slane %v3553_v38, 5  ;;  %v8204_v53 = vshrl.u32 %v6802_v13, 16  ;;  %v3513_v6 = vrot.slane %v3512_v20, 4  ;;  %v1266_v18 = vrot.slane %v1264_v35, 4 }
  0xe8   : > { %5515 = vmatprep.mubr.msk.bf16.mxu0 %vm660_vm3, %v8201_v11  ;;  %v3546_v47 = vrot.slane %v8202_v37, 4  ;;  %v3549_v31 = vrot.slane %v8203_v25, 5  ;;  %v3526_v50 = vor.u32 %v3525_v17, %v3522_v63  ;;  %v3539_v10 = vshll.u32 %v7219_v55, 16 }
  0xe9   : > { %v3559_v16 = vrot.slane %v8204_v53, 4  ;;  %v3536_v11 = vor.u32 %v3535_v28, %v7221_v42  ;;  %v4762_v26 = vrot.slane %v5964_v9, 9  ;;  %v1273_v37 = vrot.slane %v1271_v45, 4 }
  0xea   : > { %v1274_v46 = vrot.slane %v6518_v62, 5  ;;  %v5044_v25 = vcombine.low %v3460_v29, %v3470_v23  ;;  %v5045_v38 = vcombine.low %v3484_v60, %v3494_v22  ;;  %v4777_v13 = vcombine.low %v7204_v40, %v7208_v41 }
  0xeb   : > { %v3577_v20 = vshll.u32 %v6830_v7, 16  ;;  %v7262_v63 = vsel %vm6416_vm7, %v4761_v51, %v1264_v35  ;;  %v3550_v17 = vor.u32 %v3549_v31, %v3546_v47  ;;  %v3560_v28 = vor.u32 %v3559_v16, %v7246_v49 }
  0xec   : > { %v3563_v9 = vshll.u32 %v7252_v61, 16  ;;  %v3508_v62 = vsel %vm6150_vm4, %v3503_v4, %v7183_v57  ;;  %v3518_v29 = vsel %vm6150_vm4, %v3513_v6, %v3517_v58  ;;  %v7273_v23 = vsel %vm6416_vm7, %v1266_v18, %v1267_v44  ;;  %v7292_v4 = vld [vmem:[%s6124_s24 + $0x5c] sm:$0x1]  ;;  %v5965_v18 = vld [vmem:[%s6124_s24 + $0xa0] sm:$0xf] }
  0xed   : > { %v3527_v60 = vrot.slane %v3526_v50, 4  ;;  %v3537_v40 = vrot.slane %v3536_v11, 4  ;;  %v3541_v41 = vrot.slane %v3539_v10, 5  ;;  %v7277_v35 = vsel %vm6416_vm7, %v4762_v26, %v1271_v45 }
  0xee   : > { %v7281_v51 = vsel %vm6416_vm7, %v1273_v37, %v1274_v46  ;;  %v8205_v57 = vcombine.low %v7089_v5, %v7102_v30  ;;  %v8206_v22 = vcombine.low %v7054_v59, %v7075_v48  ;;  %v8207_v58 = vshrl.u32 %v6827_v39, 16  ;;  %v5966_v37 = vld [vmem:[%s6124_s24 + $0x9c] sm:$0xf] }
  0xef   : > { %v8208_v45 = vshll.u32 %v6827_v39, 16  ;;  %v7298_v47 = vrot.slane %v3577_v20, 5  ;;  %v8209_v5 = vshrl.u32 %v6830_v7, 16  ;;  %v8210_v31 = vcombine.low %v7129_v19, %v7133_v15  ;;  %v5967_v20 = vld [vmem:[%s6124_s24 + $0xa4] sm:$0x1] }
  0xf0   : > { %5364 = vmatmul.mubr.msk.bf16.gmra.mrb[12].mxu1 %vm660_vm3, %v8205_v57  ;;  %5516 = vmatmul.mubr.msk.bf16.gmra.mrb[28].mxu0 %vm660_vm3, %v8206_v22  ;;  %v3570_v26 = vrot.slane %v8207_v58, 4  ;;  %v3551_v53 = vrot.slane %v3550_v17, 4  ;;  %v3561_v16 = vrot.slane %v3560_v28, 4  ;;  %v3565_v6 = vrot.slane %v3563_v9, 5  ;;  %v8212_v57 = vld [vmem:[#allocation8_spill] sm:$0xff] }
  0xf1   : > { %v3573_v44 = vrot.slane %v8208_v45, 5  ;;  %v3583_v30 = vrot.slane %v8209_v5, 4  ;;  %5367 = vmatprep.mubr.msk.bf16.mxu1 %vm660_vm3, %v8210_v31  ;;  %5521 = vmatprep.mubr.msk.bf16.mxu0 %vm660_vm3, %v5044_v25  ;;  %v1278_v39 = vrot.slane %v5965_v18, 5  ;;  %v5046_v50 = vcombine.low %v3508_v62, %v3518_v29 }
  0xf2   : > { %v4778_v10 = vcombine.low %v7262_v63, %v7273_v23  ;;  %v3532_v7 = vsel %vm6150_vm4, %v3527_v60, %v7221_v42  ;;  %v3601_v19 = vshll.u32 %v6844_v36, 16  ;;  %v3542_v15 = vsel %vm6150_vm4, %v3537_v40, %v3541_v41  ;;  %v8211_v40 = vld [vmem:[#allocation3_spill] sm:$0xff] }
  0xf3   : > { %v4779_v11 = vcombine.low %v7277_v35, %v7281_v51  ;;  %v4763_v46 = vrot.slane %v5966_v37, 9  ;;  %v3587_v25 = vshll.u32 %v7292_v4, 16  ;;  %v1281_v17 = vrot.slane %v5967_v20, 5 }
  0xf4   : > { %v3574_v28 = vor.u32 %v3573_v44, %v3570_v26  ;;  %v3584_v9 = vor.u32 %v3583_v30, %v7298_v47  ;;  %v1285_v42 = vrot.slane %v6561_v1, 5  ;;  %v3556_v62 = vsel %vm6150_vm4, %v3551_v53, %v7246_v49  ;;  %v7342_v53 = vld [vmem:[%s6124_s24 + $0x68] sm:$0x1] }
  0xf5   : > { %v3566_v29 = vsel %vm6150_vm4, %v3561_v16, %v3565_v6  ;;  %v1280_v60 = vrot.slane %v1278_v39, 4  ;;  %v4764_v41 = vrot.slane %v8211_v40, 9  ;;  %v8213_v22 = vshrl.u32 %v8212_v57, 16  ;;  %v8216_v16 = vld [vmem:[#allocation10_spill] sm:$0xff] }
  0xf6   : > { %v8214_v45 = vshll.u32 %v8212_v57, 16  ;;  %v7333_v44 = vrot.slane %v3601_v19, 5  ;;  %v8215_v1 = vshrl.u32 %v6844_v36, 16  ;;  %v5047_v30 = vcombine.low %v3532_v7, %v3542_v15  ;;  %v8218_v7 = vld [vmem:[#allocation4_spill] sm:$0xff] }
  0xf7   : > { %v3594_v58 = vrot.slane %v8213_v22, 4  ;;  %v7339_v49 = vsel %vm6416_vm7, %v4763_v46, %v1278_v39  ;;  %v3589_v31 = vrot.slane %v3587_v25, 5  ;;  %v3625_v6 = vshll.u32 %v8216_v16, 16 }
  0xf8   : > { %v3597_v26 = vrot.slane %v8214_v45, 5  ;;  %v3607_v5 = vrot.slane %v8215_v1, 4  ;;  %v8217_v18 = vcombine.low %v7144_v43, %v7157_v52  ;;  %5522 = vmatmul.mubr.msk.bf16.vlgmr.msra.gmra.mrb[0].mxu0 %vm660_vm3, %v5045_v38  ;;  %v3575_v19 = vrot.slane %v3574_v28, 4  ;;  %v8219_v52 = vld [vmem:[#allocation12_spill] sm:$0xff]  ;;  %v8226_v1 = vld [vmem:[#allocation11_spill] sm:$0xff] }
  0xf9   : > { %v3585_v36 = vrot.slane %v3584_v9, 4  ;;  %v1287_v37 = vrot.slane %v1285_v42, 4  ;;  %v1288_v15 = vrot.slane %v8218_v7, 5  ;;  %5554 = vmatpush3.bf16.msra.mxu0 %v7195_v27  ;;  %v5048_v39 = vcombine.low %v3556_v62, %v3566_v29  ;;  %5525 = vmatprep.mubr.msk.bf16.mxu0 %vm660_vm3, %v5046_v50  ;;  %v8221_v9 = vld [vmem:[#allocation9_spill] sm:$0xff] }
  0xfa   : > { %5368 = vmatmul.mubr.msk.bf16.gmra.mrb[16].mxu1 %vm660_vm3, %v8217_v18  ;;  %v7355_v46 = vsel %vm6416_vm7, %v1280_v60, %v1281_v17  ;;  %v7359_v43 = vsel %vm6416_vm7, %v4764_v41, %v1285_v42  ;;  %v3649_v38 = vshll.u32 %v8219_v52, 16  ;;  %v3598_v25 = vor.u32 %v3597_v26, %v3594_v58  ;;  %v8225_v58 = vld [vmem:[#allocation5_spill] sm:$0xff]  ;;  %v7385_v26 = vld [vmem:[%s6124_s24 + $0x74] sm:$0x1] }
  0xfb   : > { %5371 = vmatprep.mubr.msk.bf16.mxu1 %vm660_vm3, %v4777_v13  ;;  %v3608_v20 = vor.u32 %v3607_v5, %v7333_v44  ;;  %v3611_v27 = vshll.u32 %v7342_v53, 16  ;;  %v8220_v13 = vld [vmem:[#allocation6_spill] sm:$0xff]  ;;  %v8222_v62 = vshrl.u32 %v8221_v9, 16  ;;  %v8223_v29 = vshll.u32 %v8221_v9, 16 }
  0xfc   : > { %v1292_v28 = vrot.slane %v8220_v13, 5  ;;  %v7370_v42 = vrot.slane %v3625_v6, 5  ;;  %v8224_v40 = vshrl.u32 %v8216_v16, 16  ;;  %v3580_v50 = vsel %vm6150_vm4, %v3575_v19, %v7298_v47  ;;  %v7397_v9 = vld [vmem:[%s6124_s24 + $0x80] sm:$0x1] }
  0xfd   : > { %v3618_v17 = vrot.slane %v8222_v62, 4  ;;  %v3621_v60 = vrot.slane %v8223_v29, 5  ;;  %v3590_v57 = vsel %vm6150_vm4, %v3585_v36, %v3589_v31  ;;  %v7381_v22 = vsel %vm6416_vm7, %v1287_v37, %v1288_v15  ;;  %v8230_v37 = vld [vmem:[#allocation7_spill] sm:$0xff] }
  0xfe   : > { %v3631_v41 = vrot.slane %v8224_v40, 4  ;;  %v4765_v45 = vrot.slane %v8225_v58, 9  ;;  %v8227_v5 = vshrl.u32 %v8226_v1, 16  ;;  %v8228_v16 = vshll.u32 %v8226_v1, 16 }
  0xff   : > { %v7391_v7 = vrot.slane %v3649_v38, 5  ;;  %v8229_v47 = vshrl.u32 %v8219_v52, 16  ;;  %v3599_v31 = vrot.slane %v3598_v25, 4  ;;  %v3609_v36 = vrot.slane %v3608_v20, 4 }
 0x100   : > { %v3642_v6 = vrot.slane %v8227_v5, 4  ;;  %v3645_v18 = vrot.slane %v8228_v16, 5  ;;  %v3613_v13 = vrot.slane %v3611_v27, 5  ;;  %v1295_v15 = vrot.slane %v8230_v37, 5  ;;  %5526 = vmatmul.mubr.msk.bf16.gmra.mrb[4].mxu0 %vm660_vm3, %v5047_v30  ;;  %v8231_v27 = vld [vmem:[#allocation13_spill] sm:$0xff] }
 0x101   : > { %v3655_v19 = vrot.slane %v8229_v47, 4  ;;  %v1294_v62 = vrot.slane %v1292_v28, 4  ;;  %v3622_v29 = vor.u32 %v3621_v60, %v3618_v17  ;;  %v3632_v40 = vor.u32 %v3631_v41, %v7370_v42  ;;  %5529 = vmatprep.mubr.msk.bf16.mxu0 %vm660_vm3, %v5048_v39  ;;  %v7442_v16 = vld [vmem:[%s6124_s24 + $0x8c] sm:$0x1] }
 0x102   : > { %v3635_v58 = vshll.u32 %v7385_v26, 16  ;;  %v3763_v1 = vshll.u32 %v6995_v14, 16  ;;  %5372 = vmatmul.mubr.msk.bf16.gmra.mrb[20].mxu1 %vm660_vm3, %v4778_v10  ;;  %v4780_v52 = vcombine.low %v7339_v49, %v7355_v46  ;;  %v4781_v38 = vcombine.low %v7359_v43, %v7381_v22 }
 0x103   : > { %v3673_v25 = vshll.u32 %v6899_v33, 16  ;;  %5375 = vmatprep.mubr.msk.bf16.mxu1 %vm660_vm3, %v4779_v11  ;;  %v5049_v63 = vcombine.low %v3580_v50, %v3590_v57  ;;  %v3646_v23 = vor.u32 %v3645_v18, %v3642_v6  ;;  %v3656_v10 = vor.u32 %v3655_v19, %v7391_v7  ;;  %v8235_v18 = vld [vmem:[#allocation14_spill] sm:$0xff] }
 0x104   : > { %v3659_v30 = vshll.u32 %v7397_v9, 16  ;;  %v3604_v49 = vsel %vm6150_vm4, %v3599_v31, %v7333_v44  ;;  %v3614_v46 = vsel %vm6150_vm4, %v3609_v36, %v3613_v13  ;;  %v7426_v35 = vsel %vm6416_vm7, %v4765_v45, %v1292_v28 }
 0x105   : > { %v3697_v51 = vshll.u32 %v6923_v0, 16  ;;  %v7431_v11 = vsel %vm6416_vm7, %v1294_v62, %v1295_v15  ;;  %v3623_v39 = vrot.slane %v3622_v29, 4  ;;  %v3633_v43 = vrot.slane %v3632_v40, 4  ;;  %v7459_v40 = vld [vmem:[%s6124_s24 + $0x98] sm:$0x1] }
 0x106   : > { %v3637_v20 = vrot.slane %v3635_v58, 5  ;;  %v8232_v17 = vshrl.u32 %v8231_v27, 16  ;;  %v8233_v60 = vshll.u32 %v8231_v27, 16  ;;  %v7437_v50 = vrot.slane %v3673_v25, 5  ;;  %v5968_v25 = vld [vmem:[%s6124_s24 + $0xc] sm:$0xf] }
 0x107   : > { %v8234_v28 = vshrl.u32 %v6899_v33, 16  ;;  %v5050_v22 = vcombine.low %v3604_v49, %v3614_v46  ;;  %v3647_v45 = vrot.slane %v3646_v23, 4  ;;  %v3657_v5 = vrot.slane %v3656_v10, 4 }
 0x108   : > { %v3666_v44 = vrot.slane %v8232_v17, 4  ;;  %v3669_v41 = vrot.slane %v8233_v60, 5  ;;  %v3661_v6 = vrot.slane %v3659_v30, 5  ;;  %v8236_v47 = vshrl.u32 %v8235_v18, 16  ;;  %5530 = vmatmul.mubr.msk.bf16.gmra.mrb[8].mxu0 %vm660_vm3, %v5049_v63 }
 0x109   : > { %v3679_v57 = vrot.slane %v8234_v28, 4  ;;  %v8237_v31 = vshll.u32 %v8235_v18, 16  ;;  %v7448_v13 = vrot.slane %v3697_v51, 5  ;;  %v8238_v37 = vshrl.u32 %v6923_v0, 16  ;;  %v5969_v0 = vld [vmem:[%s6124_s24 + $0x10] sm:$0xf]  ;;  %5533 = vmatprep.mubr.msk.bf16.mxu0 %vm660_vm3, %v5050_v22 }
 0x10a   : > { %v3690_v19 = vrot.slane %v8236_v47, 4  ;;  %v3773_v15 = vshrl.u32 %v6998_v3, 16  ;;  %v3628_v62 = vsel %vm6150_vm4, %v3623_v39, %v7370_v42  ;;  %v3638_v29 = vsel %vm6150_vm4, %v3633_v43, %v3637_v20  ;;  %5376 = vmatmul.mubr.msk.bf16.gmra.mrb[24].mxu1 %vm660_vm3, %v4780_v52  ;;  %v7489_v22 = vld [vmem:[%s6124_s24 + $0xa4] sm:$0x1] }
 0x10b   : > { %v3693_v36 = vrot.slane %v8237_v31, 5  ;;  %v3703_v33 = vrot.slane %v8238_v37, 4  ;;  %v3721_v58 = vshll.u32 %v6952_v21, 16  ;;  %v4848_v23 = vcombine.low %v5968_v25, %v5969_v0  ;;  %5379 = vmatprep.mubr.msk.bf16.mxu1 %vm660_vm3, %v4781_v38 }
 0x10c   : > { %v3670_v10 = vor.u32 %v3669_v41, %v3666_v44  ;;  %v3680_v30 = vor.u32 %v3679_v57, %v7437_v50  ;;  %v3683_v49 = vshll.u32 %v7442_v16, 16  ;;  %v4782_v42 = vcombine.low %v7426_v35, %v7431_v11 }
 0x10d   : > { %v3652_v52 = vsel %vm6150_vm4, %v3647_v45, %v7391_v7  ;;  %v3662_v63 = vsel %vm6150_vm4, %v3657_v5, %v3661_v6  ;;  %v3745_v46 = vshll.u32 %v6966_v2, 16  ;;  %v5051_v51 = vcombine.low %v3628_v62, %v3638_v29 }
 0x10e   : > { %v3694_v39 = vor.u32 %v3693_v36, %v3690_v19  ;;  %v3704_v43 = vor.u32 %v3703_v33, %v7448_v13  ;;  %v3707_v38 = vshll.u32 %v7459_v40, 16  ;;  %v8239_v20 = vshrl.u32 %v6949_v8, 16  ;;  %v7501_v33 = vld [vmem:[%s6124_s24 + $0xb0] sm:$0x1] }
 0x10f   : > { %v8240_v35 = vshll.u32 %v6949_v8, 16  ;;  %v7484_v17 = vrot.slane %v3721_v58, 5  ;;  %v8241_v7 = vshrl.u32 %v6952_v21, 16  ;;  %v5052_v60 = vcombine.low %v3652_v52, %v3662_v63 }
 0x110   : > { %v3714_v27 = vrot.slane %v8239_v20, 4  ;;  %v3671_v41 = vrot.slane %v3670_v10, 4  ;;  %v3681_v28 = vrot.slane %v3680_v30, 4  ;;  %v3685_v57 = vrot.slane %v3683_v49, 5  ;;  %5534 = vmatmul.mubr.msk.bf16.gmra.mrb[12].mxu0 %vm660_vm3, %v5051_v51  ;;  %v5970_v10 = vld [vmem:[%s6124_s24 + $0x18] sm:$0xf] }
 0x111   : > { %v3717_v11 = vrot.slane %v8240_v35, 5  ;;  %v3727_v44 = vrot.slane %v8241_v7, 4  ;;  %v8242_v45 = vshrl.u32 %v6961_v54, 16  ;;  %v8243_v6 = vshll.u32 %v6961_v54, 16  ;;  %5537 = vmatprep.mubr.msk.bf16.mxu0 %vm660_vm3, %v5052_v60  ;;  %v5971_v30 = vld [vmem:[%s6124_s24 + $0x1c] sm:$0xf] }
 0x112   : > { %v7495_v8 = vrot.slane %v3745_v46, 5  ;;  %v8244_v47 = vshrl.u32 %v6966_v2, 16  ;;  %v3784_v21 = vshrl.u32 %v7022_v56, 16  ;;  %v3695_v31 = vrot.slane %v3694_v39, 4  ;;  %5380 = vmatmul.mubr.msk.bf16.gmra.mrb[28].mxu1 %vm660_vm3, %v4782_v42  ;;  %v5972_v46 = vld [vmem:[%s6124_s24 + $0x24] sm:$0xf] }
 0x113   : > { %v3738_v5 = vrot.slane %v8242_v45, 4  ;;  %v3741_v18 = vrot.slane %v8243_v6, 5  ;;  %v3705_v36 = vrot.slane %v3704_v43, 4  ;;  %v3709_v37 = vrot.slane %v3707_v38, 5  ;;  %5385 = vmatprep.mubr.msk.bf16.mxu1 %vm660_vm3, %v4848_v23 }
 0x114   : > { %v3751_v19 = vrot.slane %v8244_v47, 4  ;;  %v3787_v62 = vshll.u32 %v7022_v56, 16  ;;  %v3718_v29 = vor.u32 %v3717_v11, %v3714_v27  ;;  %v3728_v54 = vor.u32 %v3727_v44, %v7484_v17  ;;  %v7530_v11 = vld [vmem:[%s6124_s24 + $0xbc] sm:$0x1] }
 0x115   : > { %v3731_v58 = vshll.u32 %v7489_v22, 16  ;;  %v3797_v2 = vshrl.u32 %v7030_v34, 16  ;;  %v3676_v25 = vsel %vm6150_vm4, %v3671_v41, %v7437_v50  ;;  %v3686_v56 = vsel %vm6150_vm4, %v3681_v28, %v3685_v57  ;;  %v5973_v50 = vld [vmem:[%s6124_s24 + $0x28] sm:$0xf] }
 0x116   : > { %v3769_v0 = vshll.u32 %v6998_v3, 16  ;;  %v4849_v49 = vcombine.low %v5970_v10, %v5971_v30  ;;  %v3742_v42 = vor.u32 %v3741_v18, %v3738_v5  ;;  %v3752_v52 = vor.u32 %v3751_v19, %v7495_v8 }
 0x117   : > { %v3755_v63 = vshll.u32 %v7501_v33, 16  ;;  %v4850_v51 = vcombine.low %v5972_v46, %v5973_v50  ;;  %v3700_v39 = vsel %vm6150_vm4, %v3695_v31, %v7448_v13  ;;  %v3710_v23 = vsel %vm6150_vm4, %v3705_v36, %v3709_v37  ;;  %v7548_v31 = vld [vmem:[%s6124_s24 + $0xc8] sm:$0x1]  ;;  %v8246_v37 = vld [vmem:[#allocation2_spill] sm:$0xff] }
 0x118   : > { %v3793_v43 = vshll.u32 %v7030_v34, 16  ;;  %v5053_v38 = vcombine.low %v3676_v25, %v3686_v56  ;;  %v3719_v20 = vrot.slane %v3718_v29, 4  ;;  %v3729_v27 = vrot.slane %v3728_v54, 4  ;;  %v5974_v25 = vld [vmem:[%s6124_s24 + $0x30] sm:$0xf] }
 0x119   : > { %v3733_v35 = vrot.slane %v3731_v58, 5  ;;  %v8245_v7 = vshrl.u32 %v6995_v14, 16  ;;  %v3765_v60 = vrot.slane %v3763_v1, 5  ;;  %v7536_v41 = vrot.slane %v3769_v0, 5  ;;  %v5975_v56 = vld [vmem:[%s6124_s24 + $0x34] sm:$0xf] }
 0x11a   : > { %v3775_v13 = vrot.slane %v3773_v15, 4  ;;  %v5054_v28 = vcombine.low %v3700_v39, %v3710_v23  ;;  %v3743_v34 = vrot.slane %v3742_v42, 4  ;;  %v3753_v57 = vrot.slane %v3752_v52, 4  ;;  %5386 = vmatmul.mubr.msk.bf16.vlgmr.msra.gmra.mrb[0].mxu1 %vm660_vm3, %v4849_v49  ;;  %5538 = vmatmul.mubr.msk.bf16.gmra.mrb[16].mxu0 %vm660_vm3, %v5053_v38  ;;  %v5976_v52 = vld [vmem:[%s6124_s24 + $0x3c] sm:$0xf] }
 0x11b   : > { %v3762_v44 = vrot.slane %v8245_v7, 4  ;;  %v3757_v45 = vrot.slane %v3755_v63, 5  ;;  %v3786_v5 = vrot.slane %v3784_v21, 4  ;;  %v3789_v6 = vrot.slane %v3787_v62, 5  ;;  %5588 = vmatpush3.bf16.msra.mxu1 %v8246_v37  ;;  %5389 = vmatprep.mubr.msk.bf16.mxu1 %vm660_vm3, %v4850_v51  ;;  %v5977_v63 = vld [vmem:[%s6124_s24 + $0x40] sm:$0xf] }
 0x11c   : > { %v7540_v18 = vrot.slane %v3793_v43, 5  ;;  %v3799_v47 = vrot.slane %v3797_v2, 4  ;;  %v3808_v19 = vshrl.u32 %v7054_v59, 16  ;;  %v3724_v14 = vsel %vm6150_vm4, %v3719_v20, %v7484_v17  ;;  %5541 = vmatprep.mubr.msk.bf16.mxu0 %vm660_vm3, %v5054_v28  ;;  %v7575_v20 = vld [vmem:[%s6124_s24 + $0xd4] sm:$0x1] }
 0x11d   : > { %v3779_v1 = vshll.u32 %v7530_v11, 16  ;;  %v3811_v3 = vshll.u32 %v7054_v59, 16  ;;  %v3734_v15 = vsel %vm6150_vm4, %v3729_v27, %v3733_v35  ;;  %v3766_v21 = vor.u32 %v3765_v60, %v3762_v44  ;;  %v5978_v44 = vld [vmem:[%s6124_s24 + $0x1c] sm:$0xf] }
 0x11e   : > { %v3776_v36 = vor.u32 %v3775_v13, %v7536_v41  ;;  %v3821_v17 = vshrl.u32 %v7075_v48, 16  ;;  %v3748_v59 = vsel %vm6150_vm4, %v3743_v34, %v7495_v8  ;;  %v3817_v62 = vshll.u32 %v7075_v48, 16  ;;  %v7586_v13 = vld [vmem:[%s6124_s24 + $0x78] sm:$0xf] }
 0x11f   : > { %v3758_v29 = vsel %vm6150_vm4, %v3753_v57, %v3757_v45  ;;  %v3790_v54 = vor.u32 %v3789_v6, %v3786_v5  ;;  %v3800_v58 = vor.u32 %v3799_v47, %v7540_v18  ;;  %v3803_v2 = vshll.u32 %v7548_v31, 16  ;;  %v7595_v45 = vld [vmem:[%s6124_s24 + $0x7c] sm:$0xf] }
 0x120   : > { %v4851_v0 = vcombine.low %v5974_v25, %v5975_v56  ;;  %v5055_v10 = vcombine.low %v3724_v14, %v3734_v15  ;;  %v3781_v8 = vrot.slane %v3779_v1, 5  ;;  %v3767_v30 = vrot.slane %v3766_v21, 4  ;;  %v5982_v14 = vld [vmem:[%s6124_s24 + $0x4c] sm:$0xf]  ;;  %v5983_v15 = vld [vmem:[%s6124_s24 + $0x54] sm:$0xf] }
 0x121   : > { %v3777_v49 = vrot.slane %v3776_v36, 4  ;;  %v3810_v48 = vrot.slane %v3808_v19, 4  ;;  %v3813_v42 = vrot.slane %v3811_v3, 5  ;;  %v4852_v46 = vcombine.low %v5976_v52, %v5977_v63  ;;  %v5981_v19 = vld [vmem:[%s6124_s24 + $0x48] sm:$0xf] }
 0x122   : > { %v5056_v50 = vcombine.low %v3748_v59, %v3758_v29  ;;  %v7572_v51 = vrot.slane %v3817_v62, 5  ;;  %v3823_v39 = vrot.slane %v3821_v17, 4  ;;  %v3791_v23 = vrot.slane %v3790_v54, 4  ;;  %5390 = vmatmul.mubr.msk.bf16.gmra.mrb[4].mxu1 %vm660_vm3, %v4851_v0  ;;  %5542 = vmatmul.mubr.msk.bf16.gmra.mrb[20].mxu0 %vm660_vm3, %v5055_v10  ;;  %v5984_v21 = vld [vmem:[%s6124_s24 + $0x58] sm:$0xf] }
 0x123   : > { %v3801_v43 = vrot.slane %v3800_v58, 4  ;;  %v3805_v38 = vrot.slane %v3803_v2, 5  ;;  %v3772_v27 = vsel %vm6150_vm4, %v3767_v30, %v7536_v41  ;;  %v3782_v35 = vsel %vm6150_vm4, %v3777_v49, %v3781_v8  ;;  %5393 = vmatprep.mubr.msk.bf16.mxu1 %vm660_vm3, %v4852_v46  ;;  %v5985_v17 = vld [vmem:[%s6124_s24 + $0x28] sm:$0xf]  ;;  %v5986_v62 = vld [vmem:[%s6124_s24 + $0x18] sm:$0xf] }
 0x124   : > { %v3814_v7 = vor.u32 %v3813_v42, %v3810_v48  ;;  %v4143_v60 = vrot.slane %v5978_v44, 5  ;;  %v2186_v28 = vshrl.u32 %v7586_v13, 16  ;;  %5545 = vmatprep.mubr.msk.bf16.mxu0 %vm660_vm3, %v5056_v50  ;;  %v3824_v41 = vor.u32 %v3823_v39, %v7572_v51  ;;  %v8247_v58 = vld [vmem:[#allocation15_spill] sm:$0xff]  ;;  %v5987_v0 = vld [vmem:[%s6124_s24 + $0x34] sm:$0xf] }
 0x125   : > { %v3827_v34 = vshll.u32 %v7575_v20, 16  ;;  %v2189_v57 = vshll.u32 %v7586_v13, 16  ;;  %v2195_v5 = vshll.u32 %v7595_v45, 16  ;;  %v3796_v6 = vsel %vm6150_vm4, %v3791_v23, %v7540_v18  ;;  %v5988_v42 = vld [vmem:[%s6124_s24 + $0x24] sm:$0xf] }
 0x126   : > { %v3806_v47 = vsel %vm6150_vm4, %v3801_v43, %v3805_v38  ;;  %v4853_v1 = vcombine.low %v5981_v19, %v5982_v14  ;;  %v5057_v3 = vcombine.low %v3772_v27, %v3782_v35  ;;  %v4854_v36 = vcombine.low %v5983_v15, %v5984_v21  ;;  %v5989_v43 = vld [vmem:[%s6124_s24 + $0x30] sm:$0xf]  ;;  %v7660_v15 = vld [vmem:[%s6124_s24 + $0x84] sm:$0xf]  ;;  %v7663_v21 = vld [vmem:[%s6124_s24 + $0x88] sm:$0xf] }
 0x127   : > { %v4150_v37 = vrot.slane %v5985_v17, 5  ;;  %v3815_v59 = vrot.slane %v3814_v7, 4  ;;  %v5076_v29 = vrot.slane %v5986_v62, 9  ;;  %v4145_v54 = vrot.slane %v4143_v60, 4  ;;  %v5990_v7 = vld [vmem:[%s6124_s24 + $0x40] sm:$0xf] }
 0x128   : > { %v4146_v18 = vrot.slane %v8247_v58, 5  ;;  %v5058_v2 = vcombine.low %v3796_v6, %v3806_v47  ;;  %v3825_v25 = vrot.slane %v3824_v41, 4  ;;  %v3829_v56 = vrot.slane %v3827_v34, 5  ;;  %v5992_v34 = vld [vmem:[%s6124_s24 + $0x60] sm:$0xf] }
 0x129   : > { %v4157_v10 = vrot.slane %v5987_v0, 5  ;;  %v7611_v8 = vrot.slane %v2186_v28, 4  ;;  %v7613_v30 = vrot.slane %v2189_v57, 5  ;;  %v2199_v49 = vshrl.u32 %v7595_v45, 16  ;;  %v7639_v28 = vld [vmem:[%s6124_s24 + $0x80] sm:$0x1] }
 0x12a   : > { %v7616_v48 = vrot.slane %v2195_v5, 5  ;;  %v5077_v52 = vrot.slane %v5988_v42, 9  ;;  %v4152_v63 = vrot.slane %v4150_v37, 4  ;;  %v4153_v46 = vrot.slane %v7116_v24, 5  ;;  %5394 = vmatmul.mubr.msk.bf16.gmra.mrb[8].mxu1 %vm660_vm3, %v4853_v1  ;;  %5546 = vmatmul.mubr.msk.bf16.gmra.mrb[24].mxu0 %vm660_vm3, %v5057_v3  ;;  %v5993_v57 = vld [vmem:[%s6124_s24 + $0x64] sm:$0xf] }
 0x12b   : > { %v3820_v50 = vsel %vm6150_vm4, %v3815_v59, %v7572_v51  ;;  %v4144_v39 = vsel %vm6416_vm7, %v5076_v29, %v4143_v60  ;;  %v4147_v23 = vsel %vm6416_vm7, %v4145_v54, %v4146_v18  ;;  %v5078_v24 = vrot.slane %v5989_v43, 9  ;;  %5397 = vmatprep.mubr.msk.bf16.mxu1 %vm660_vm3, %v4854_v36  ;;  %5549 = vmatprep.mubr.msk.bf16.mxu0 %vm660_vm3, %v5058_v2  ;;  %v8248_v51 = vld [vmem:[#allocation16_spill] sm:$0xff]  ;;  %v5994_v6 = vld [vmem:[%s6124_s24 + $0x6c] sm:$0xf]  ;;  %v5998_v62 = vld [vmem:[%s6124_s24 + $0x3c] sm:$0xf] }
 0x12c   : > { %v3830_v38 = vsel %vm6150_vm4, %v3825_v25, %v3829_v56  ;;  %v4159_v27 = vrot.slane %v4157_v10, 4  ;;  %v4160_v35 = vrot.slane %v8248_v51, 5  ;;  %v4164_v44 = vrot.slane %v5990_v7, 5  ;;  %v7646_v47 = vld [vmem:[%s6124_s24 + $0x70] sm:$0xf] }
 0x12d   : > { %v7636_v60 = vrot.slane %v2199_v49, 4  ;;  %v2205_v41 = vshll.u32 %v7639_v28, 16  ;;  %v4855_v5 = vcombine.low %v5992_v34, %v5993_v57  ;;  %v4856_v19 = vcombine.low %v5994_v6, %v7646_v47  ;;  %v7677_v58 = vld [vmem:[%s6124_s24 + $0x94] sm:$0xf]  ;;  %v7680_v18 = vld [vmem:[%s6124_s24 + $0x90] sm:$0xf] }
 0x12e   : > { %v4857_v14 = vcombine.low %v7586_v13, %v7595_v45  ;;  %v7653_v1 = vsel %vm6416_vm7, %v5077_v52, %v4150_v37  ;;  %v7657_v3 = vsel %vm6416_vm7, %v4152_v63, %v4153_v46  ;;  %v4858_v36 = vcombine.low %v7660_v15, %v7663_v21  ;;  %v7689_v63 = vld [vmem:[%s6124_s24 + $0x9c] sm:$0xf]  ;;  %v7692_v46 = vld [vmem:[%s6124_s24 + $0xa0] sm:$0xf]  ;;  %v6005_v43 = vld [vmem:[%s6124_s24 + $0x58] sm:$0xf] }
 0x12f   : > { %v5059_v17 = vcombine.low %v3820_v50, %v3830_v38  ;;  %v5093_v59 = vcombine.low %v4144_v39, %v4147_v23  ;;  %v7669_v37 = vsel %vm6416_vm7, %v5078_v24, %v4157_v10  ;;  %v5079_v29 = vrot.slane %v5998_v62, 9  ;;  %v6001_v10 = vld [vmem:[%s6124_s24 + $0x4c] sm:$0xf]  ;;  %v6004_v39 = vld [vmem:[%s6124_s24 + $0x48] sm:$0xf] }
 0x130   : > { %v7674_v54 = vsel %vm6416_vm7, %v4159_v27, %v4160_v35  ;;  %v4859_v2 = vcombine.low %v7680_v18, %v7677_v58  ;;  %v4166_v25 = vrot.slane %v4164_v44, 4  ;;  %v4167_v56 = vrot.slane %v7219_v55, 5  ;;  %v6006_v24 = vld [vmem:[%s6124_s24 + $0x64] sm:$0xf]  ;;  %v6007_v7 = vld [vmem:[%s6124_s24 + $0x70] sm:$0xf] }
 0x131   : > { %v5094_v0 = vcombine.low %v7653_v1, %v7657_v3  ;;  %v4171_v49 = vrot.slane %v6001_v10, 5  ;;  %v2162_v42 = vshrl.u32 %v5994_v6, 16  ;;  %v2165_v52 = vshll.u32 %v5994_v6, 16  ;;  %v6009_v62 = vld [vmem:[%s6124_s24 + $0x60] sm:$0xf] }
 0x132   : > { %v4860_v50 = vcombine.low %v7689_v63, %v7692_v46  ;;  %v5080_v23 = vrot.slane %v6004_v39, 9  ;;  %v4178_v55 = vrot.slane %v6005_v43, 5  ;;  %v4185_v38 = vrot.slane %v6006_v24, 5  ;;  %5398 = vmatmul.mubr.msk.bf16.gmra.mrb[12].mxu1 %vm660_vm3, %v4855_v5  ;;  %5550 = vmatmul.mubr.msk.bf16.gmra.mrb[28].mxu0 %vm660_vm3, %v5059_v17  ;;  %v6008_v5 = vld [vmem:[%s6124_s24 + $0x54] sm:$0xf] }
 0x133   : > { %v5095_v27 = vcombine.low %v7669_v37, %v7674_v54  ;;  %v7705_v51 = vsel %vm6416_vm7, %v5079_v29, %v4164_v44  ;;  %v4174_v35 = vrot.slane %v7252_v61, 5  ;;  %v4192_v34 = vrot.slane %v6007_v7, 5  ;;  %5401 = vmatprep.mubr.msk.bf16.mxu1 %vm660_vm3, %v4856_v19  ;;  %5555 = vmatprep.mubr.msk.bf16.mxu0 %vm660_vm3, %v5093_v59  ;;  %v6012_v10 = vld [vmem:[%s6124_s24 + $0x6c] sm:$0xf]  ;;  %v7792_v45 = vld [vmem:[%s6124_s24 + $0xc4] sm:$0xf] }
 0x134   : > { %v7713_v57 = vsel %vm6416_vm7, %v4166_v25, %v4167_v56  ;;  %v5081_v6 = vrot.slane %v6008_v5, 9  ;;  %v2171_v44 = vshll.u32 %v7646_v47, 16  ;;  %v2175_v1 = vshrl.u32 %v7646_v47, 16  ;;  %v7722_v25 = vld [vmem:[%s6124_s24 + $0xac] sm:$0xf] }
 0x135   : > { %v4173_v61 = vrot.slane %v4171_v49, 4  ;;  %v4181_v3 = vrot.slane %v7292_v4, 5  ;;  %v2164_v17 = vrot.slane %v2162_v42, 4  ;;  %v2167_v19 = vrot.slane %v2165_v52, 5  ;;  %v7725_v56 = vld [vmem:[%s6124_s24 + $0xa8] sm:$0xf] }
 0x136   : > { %v4180_v37 = vrot.slane %v4178_v55, 4  ;;  %v5082_v59 = vrot.slane %v6009_v62, 9  ;;  %v4187_v29 = vrot.slane %v4185_v38, 4  ;;  %v4188_v54 = vrot.slane %v7342_v53, 5  ;;  %v7749_v62 = vld [vmem:[%s6124_s24 + $0xb4] sm:$0xf] }
 0x137   : > { %v4861_v47 = vcombine.low %v7725_v56, %v7722_v25  ;;  %v5083_v39 = vrot.slane %v6012_v10, 9  ;;  %v4194_v4 = vrot.slane %v4192_v34, 4  ;;  %v4195_v42 = vrot.slane %v7385_v26, 5  ;;  %v7746_v26 = vld [vmem:[%s6124_s24 + $0xb8] sm:$0xf] }
 0x138   : > { %v5096_v52 = vcombine.low %v7705_v51, %v7713_v57  ;;  %v7735_v43 = vsel %vm6416_vm7, %v5080_v23, %v4171_v49  ;;  %v7737_v53 = vrot.slane %v2171_v44, 5  ;;  %v2177_v24 = vrot.slane %v2175_v1, 4  ;;  %v6015_v57 = vld [vmem:[%s6124_s24 + $0x7c] sm:$0xf]  ;;  %v6016_v1 = vld [vmem:[%s6124_s24 + $0x74] sm:$0x1] }
 0x139   : > { %v4175_v7 = vsel %vm6416_vm7, %v4173_v61, %v4174_v35  ;;  %v7743_v5 = vsel %vm6416_vm7, %v5081_v6, %v4178_v55  ;;  %v4862_v49 = vcombine.low %v7749_v62, %v7746_v26  ;;  %v2168_v23 = vor.u32 %v2167_v19, %v2164_v17 }
 0x13a   : > { %v7755_v51 = vsel %vm6416_vm7, %v4180_v37, %v4181_v3  ;;  %v7759_v35 = vsel %vm6416_vm7, %v5082_v59, %v4185_v38  ;;  %v7763_v55 = vsel %vm6416_vm7, %v4187_v29, %v4188_v54  ;;  %v4199_v6 = vrot.slane %v6015_v57, 5  ;;  %5402 = vmatmul.mubr.msk.bf16.gmra.mrb[16].mxu1 %vm660_vm3, %v4857_v14  ;;  %5556 = vmatmul.mubr.msk.bf16.vlgmr.msra.gmra.mrb[0].mxu0 %vm660_vm3, %v5094_v0  ;;  %v6017_v3 = vld [vmem:[%s6124_s24 + $0x78] sm:$0xf]  ;;  %v7795_v14 = vld [vmem:[%s6124_s24 + $0xc0] sm:$0xf] }
 0x13b   : > { %v7773_v44 = vsel %vm6416_vm7, %v5083_v39, %v4192_v34  ;;  %v7777_v38 = vsel %vm6416_vm7, %v4194_v4, %v4195_v42  ;;  %v2181_v61 = vshll.u32 %v6016_v1, 16  ;;  %v5084_v17 = vrot.slane %v6017_v3, 9  ;;  %5405 = vmatprep.mubr.msk.bf16.mxu1 %vm660_vm3, %v4858_v36  ;;  %5559 = vmatprep.mubr.msk.bf16.mxu0 %vm660_vm3, %v5095_v27  ;;  %v6020_v4 = vld [vmem:[%s6124_s24 + $0x84] sm:$0xf]  ;;  %v6021_v57 = vld [vmem:[%s6124_s24 + $0x88] sm:$0xf] }
 0x13c   : > { %v7783_v19 = vrot.slane %v2205_v41, 5  ;;  %v5097_v13 = vcombine.low %v7735_v43, %v4175_v7  ;;  %v4863_v0 = vcombine.low %v7795_v14, %v7792_v45  ;;  %v2178_v28 = vor.u32 %v2177_v24, %v7737_v53  ;;  %v6022_v1 = vld [vmem:[%s6124_s24 + $0x94] sm:$0xf] }
 0x13d   : > { %v5098_v41 = vcombine.low %v7743_v5, %v7755_v51  ;;  %v7802_v34 = vrot.slane %v2168_v23, 4  ;;  %v2192_v36 = vor.u32 %v7613_v30, %v7611_v8  ;;  %v2202_v27 = vor.u32 %v7636_v60, %v7616_v48 }
 0x13e   : > { %v5099_v37 = vcombine.low %v7759_v35, %v7763_v55  ;;  %v5100_v59 = vcombine.low %v7773_v44, %v7777_v38  ;;  %v4201_v29 = vrot.slane %v4199_v6, 4  ;;  %v4202_v54 = vrot.slane %v7397_v9, 5 }
 0x13f   : > { %v7813_v10 = vrot.slane %v2181_v61, 5  ;;  %v7817_v39 = vsel %vm6416_vm7, %v5084_v17, %v4199_v6  ;;  %v2210_v8 = vshrl.u32 %v7660_v15, 16  ;;  %v2213_v30 = vshll.u32 %v7660_v15, 16 }
 0x140   : > { %v7821_v60 = vrot.slane %v2178_v28, 4  ;;  %v5085_v42 = vrot.slane %v6020_v4, 9  ;;  %v2219_v43 = vshll.u32 %v7663_v21, 16  ;;  %v2223_v24 = vshrl.u32 %v7663_v21, 16 }
 0x141   : > { %v2174_v9 = vsel %vm6150_vm4, %v7802_v34, %v7737_v53  ;;  %v7830_v7 = vrot.slane %v2192_v36, 4  ;;  %v7832_v23 = vrot.slane %v2202_v27, 4  ;;  %v4206_v6 = vrot.slane %v6021_v57, 5 }
 0x142   : > { %v7837_v15 = vsel %vm6416_vm7, %v4201_v29, %v4202_v54  ;;  %v4213_v61 = vrot.slane %v6022_v1, 5  ;;  %v2234_v3 = vshrl.u32 %v7680_v18, 16  ;;  %v2237_v21 = vshll.u32 %v7680_v18, 16  ;;  %5406 = vmatmul.mubr.msk.bf16.gmra.mrb[20].mxu1 %vm660_vm3, %v4859_v2  ;;  %5560 = vmatmul.mubr.msk.bf16.gmra.mrb[4].mxu0 %vm660_vm3, %v5096_v52  ;;  %v6023_v54 = vld [vmem:[%s6124_s24 + $0x8c] sm:$0x1] }
 0x143   : > { %v2212_v17 = vrot.slane %v2210_v8, 4  ;;  %v2215_v28 = vrot.slane %v2213_v30, 5  ;;  %v2243_v36 = vshll.u32 %v7677_v58, 16  ;;  %v2247_v27 = vshrl.u32 %v7677_v58, 16  ;;  %5409 = vmatprep.mubr.msk.bf16.mxu1 %vm660_vm3, %v4860_v50  ;;  %5563 = vmatprep.mubr.msk.bf16.mxu0 %vm660_vm3, %v5097_v13  ;;  %v6024_v30 = vld [vmem:[%s6124_s24 + $0x90] sm:$0xf] }
 0x144   : > { %v2184_v18 = vsel %vm6150_vm4, %v7821_v60, %v7813_v10  ;;  %v4209_v2 = vrot.slane %v7442_v16, 5  ;;  %v7859_v52 = vrot.slane %v2219_v43, 5  ;;  %v2225_v29 = vrot.slane %v2223_v24, 4 }
 0x145   : > { %v5101_v58 = vcombine.low %v7817_v39, %v7837_v15  ;;  %v2198_v50 = vsel %vm6150_vm4, %v7830_v7, %v7616_v48  ;;  %v4208_v13 = vrot.slane %v4206_v6, 4  ;;  %v2229_v8 = vshll.u32 %v6023_v54, 16 }
 0x146   : > { %v5086_v4 = vrot.slane %v6024_v30, 9  ;;  %v4215_v10 = vrot.slane %v4213_v61, 4  ;;  %v2236_v60 = vrot.slane %v2234_v3, 4  ;;  %v2239_v16 = vrot.slane %v2237_v21, 5  ;;  %v6025_v3 = vld [vmem:[%s6124_s24 + $0xa0] sm:$0xf] }
 0x147   : > { %v2216_v43 = vor.u32 %v2215_v28, %v2212_v17  ;;  %v4216_v24 = vrot.slane %v7459_v40, 5  ;;  %v7870_v57 = vrot.slane %v2243_v36, 5  ;;  %v2249_v1 = vrot.slane %v2247_v27, 4 }
 0x148   : > { %v2208_v48 = vsel %vm6150_vm4, %v7832_v23, %v7783_v19  ;;  %v7878_v7 = vsel %vm6416_vm7, %v5085_v42, %v4206_v6  ;;  %v2226_v54 = vor.u32 %v2225_v29, %v7859_v52  ;;  %v4220_v21 = vrot.slane %v6025_v3, 5 }
 0x149   : > { %v7884_v40 = vsel %vm6416_vm7, %v4208_v13, %v4209_v2  ;;  %v2231_v17 = vrot.slane %v2229_v8, 5  ;;  %v2258_v28 = vshrl.u32 %v7689_v63, 16  ;;  %v2261_v36 = vshll.u32 %v7689_v63, 16  ;;  %v6026_v2 = vld [vmem:[%s6124_s24 + $0x98] sm:$0x1] }
 0x14a   : > { %v7890_v19 = vsel %vm6416_vm7, %v5086_v4, %v4213_v61  ;;  %v2240_v42 = vor.u32 %v2239_v16, %v2236_v60  ;;  %v2267_v23 = vshll.u32 %v7692_v46, 16  ;;  %v2271_v6 = vshrl.u32 %v7692_v46, 16  ;;  %5410 = vmatmul.mubr.msk.bf16.gmra.mrb[24].mxu1 %vm660_vm3, %v4861_v47  ;;  %5564 = vmatmul.mubr.msk.bf16.gmra.mrb[8].mxu0 %vm660_vm3, %v5098_v41  ;;  %v6027_v47 = vld [vmem:[%s6124_s24 + $0x9c] sm:$0xf]  ;;  %v6028_v60 = vld [vmem:[%s6124_s24 + $0xac] sm:$0xf] }
 0x14b   : > { %v2217_v63 = vrot.slane %v2216_v43, 4  ;;  %v7904_v61 = vsel %vm6416_vm7, %v4215_v10, %v4216_v24  ;;  %v2250_v27 = vor.u32 %v2249_v1, %v7870_v57  ;;  %v2253_v29 = vshll.u32 %v6026_v2, 16  ;;  %5413 = vmatprep.mubr.msk.bf16.mxu1 %vm660_vm3, %v4862_v49  ;;  %5567 = vmatprep.mubr.msk.bf16.mxu0 %vm660_vm3, %v5099_v37  ;;  %v6029_v43 = vld [vmem:[%s6124_s24 + $0xa4] sm:$0x1] }
 0x14c   : > { %v2227_v46 = vrot.slane %v2226_v54, 4  ;;  %v5087_v5 = vrot.slane %v6027_v47, 9  ;;  %v4222_v51 = vrot.slane %v4220_v21, 4  ;;  %v4223_v41 = vrot.slane %v7489_v22, 5 }
 0x14d   : > { %v4889_v13 = vcombine.low %v2174_v9, %v2184_v18  ;;  %v7923_v8 = vcombine.low %v2198_v50, %v2208_v48  ;;  %v2260_v49 = vrot.slane %v2258_v28, 4  ;;  %v2263_v35 = vrot.slane %v2261_v36, 5 }
 0x14e   : > { %v5102_v55 = vcombine.low %v7878_v7, %v7884_v40  ;;  %v2241_v37 = vrot.slane %v2240_v42, 4  ;;  %v7927_v30 = vrot.slane %v2267_v23, 5  ;;  %v2273_v4 = vrot.slane %v2271_v6, 4 }
 0x14f   : > { %v2222_v22 = vsel %vm6150_vm4, %v2217_v63, %v7859_v52  ;;  %v5103_v53 = vcombine.low %v7890_v19, %v7904_v61  ;;  %v2251_v34 = vrot.slane %v2250_v27, 4  ;;  %v2255_v9 = vrot.slane %v2253_v29, 5 }
 0x150   : > { %v2232_v18 = vsel %vm6150_vm4, %v2227_v46, %v2231_v17  ;;  %v7938_v50 = vsel %vm6416_vm7, %v5087_v5, %v4220_v21  ;;  %v7942_v10 = vsel %vm6416_vm7, %v4222_v51, %v4223_v41  ;;  %v4227_v16 = vrot.slane %v6028_v60, 5  ;;  %v6035_v60 = vld [vmem:[%s6124_s24 + $0xc4] sm:$0xf] }
 0x151   : > { %v2264_v52 = vor.u32 %v2263_v35, %v2260_v49  ;;  %v2277_v24 = vshll.u32 %v6029_v43, 16  ;;  %v2282_v1 = vshrl.u32 %v7725_v56, 16  ;;  %v2285_v48 = vshll.u32 %v7725_v56, 16  ;;  %v6032_v35 = vld [vmem:[%s6124_s24 + $0xb4] sm:$0xf] }
 0x152   : > { %v2246_v54 = vsel %vm6150_vm4, %v2241_v37, %v7870_v57  ;;  %v2274_v3 = vor.u32 %v2273_v4, %v7927_v30  ;;  %v2291_v21 = vshll.u32 %v7722_v25, 16  ;;  %v2295_v17 = vshrl.u32 %v7722_v25, 16  ;;  %5414 = vmatmul.mubr.msk.bf16.gmra.mrb[28].mxu1 %vm660_vm3, %v4863_v0  ;;  %5568 = vmatmul.mubr.msk.bf16.gmra.mrb[12].mxu0 %vm660_vm3, %v5100_v59  ;;  %v6030_v57 = vld [vmem:[%s6124_s24 + $0xa8] sm:$0xf] }
 0x153   : > { %v2256_v56 = vsel %vm6150_vm4, %v2251_v34, %v2255_v9  ;;  %v5088_v28 = vrot.slane %v6030_v57, 9  ;;  %v2306_v36 = vshrl.u32 %v7749_v62, 16  ;;  %v2309_v42 = vshll.u32 %v7749_v62, 16  ;;  %5435 = vmatprep.mubr.msk.bf16.mxu1 %vm660_vm3, %v4889_v13  ;;  %5571 = vmatprep.mubr.msk.bf16.mxu0 %vm660_vm3, %v5101_v58  ;;  %v6031_v13 = vld [vmem:[%s6124_s24 + $0xb0] sm:$0x1] }
 0x154   : > { %v4229_v25 = vrot.slane %v4227_v16, 4  ;;  %v4230_v44 = vrot.slane %v7501_v33, 5  ;;  %v2315_v38 = vshll.u32 %v7746_v26, 16  ;;  %v2319_v0 = vshrl.u32 %v7746_v26, 16  ;;  %v6033_v34 = vld [vmem:[%s6124_s24 + $0xb8] sm:$0xf] }
 0x155   : > { %v4891_v59 = vcombine.low %v2222_v22, %v2232_v18  ;;  %v2265_v23 = vrot.slane %v2264_v52, 4  ;;  %v2284_v6 = vrot.slane %v2282_v1, 4  ;;  %v2287_v63 = vrot.slane %v2285_v48, 5  ;;  %v6034_v18 = vld [vmem:[%s6124_s24 + $0xbc] sm:$0x1] }
 0x156   : > { %v2275_v62 = vrot.slane %v2274_v3, 4  ;;  %v2279_v27 = vrot.slane %v2277_v24, 5  ;;  %v7975_v2 = vrot.slane %v2291_v21, 5  ;;  %v2297_v39 = vrot.slane %v2295_v17, 4  ;;  %v6036_v17 = vld [vmem:[%s6124_s24 + $0xc0] sm:$0xf] }
 0x157   : > { %v4892_v15 = vcombine.low %v2246_v54, %v2256_v56  ;;  %v5104_v33 = vcombine.low %v7938_v50, %v7942_v10  ;;  %v2308_v58 = vrot.slane %v2306_v36, 4  ;;  %v2311_v29 = vrot.slane %v2309_v42, 5 }
 0x158   : > { %v4228_v26 = vsel %vm6416_vm7, %v5088_v28, %v4227_v16  ;;  %v4231_v46 = vsel %vm6416_vm7, %v4229_v25, %v4230_v44  ;;  %v7983_v47 = vrot.slane %v2315_v38, 5  ;;  %v2321_v5 = vrot.slane %v2319_v0, 4 }
 0x159   : > { %v2270_v51 = vsel %vm6150_vm4, %v2265_v23, %v7927_v30  ;;  %v2288_v41 = vor.u32 %v2287_v63, %v2284_v6  ;;  %v2301_v49 = vshll.u32 %v6031_v13, 16  ;;  %v5089_v37 = vrot.slane %v6032_v35, 9 }
 0x15a   : > { %v2280_v4 = vsel %vm6150_vm4, %v2275_v62, %v2279_v27  ;;  %v2298_v22 = vor.u32 %v2297_v39, %v7975_v2  ;;  %v4234_v9 = vrot.slane %v6033_v34, 5  ;;  %v2325_v50 = vshll.u32 %v6034_v18, 16  ;;  %5436 = vmatmul.mubr.msk.bf16.vlgmr.msra.gmra.mrb[16].mxu1 %vm660_vm3, %v7923_v8  ;;  %5572 = vmatmul.mubr.msk.bf16.gmra.mrb[16].mxu0 %vm660_vm3, %v5102_v55  ;;  %v6038_v27 = vld [vmem:[%s6124_s24 + $0xd0] sm:$0xf] }
 0x15b   : > { %v5105_v30 = vcombine.low %v4228_v26, %v4231_v46  ;;  %v2312_v10 = vor.u32 %v2311_v29, %v2308_v58  ;;  %v4241_v16 = vrot.slane %v6035_v60, 5  ;;  %v2330_v52 = vshrl.u32 %v7795_v14, 16  ;;  %5439 = vmatprep.mubr.msk.bf16.mxu1 %vm660_vm3, %v4891_v59  ;;  %5575 = vmatprep.mubr.msk.bf16.mxu0 %vm660_vm3, %v5103_v53  ;;  %v6037_v59 = vld [vmem:[%s6124_s24 + $0xc8] sm:$0x1]  ;;  %v6039_v26 = vld [vmem:[%s6124_s24 + $0xcc] sm:$0xf] }
 0x15c   : > { %v2322_v8 = vor.u32 %v2321_v5, %v7983_v47  ;;  %v2333_v7 = vshll.u32 %v7795_v14, 16  ;;  %v2339_v40 = vshll.u32 %v7792_v45, 16  ;;  %v2343_v55 = vshrl.u32 %v7792_v45, 16 }
 0x15d   : > { %v4893_v43 = vcombine.low %v2270_v51, %v2280_v4  ;;  %v2289_v24 = vrot.slane %v2288_v41, 4  ;;  %v2303_v1 = vrot.slane %v2301_v49, 5  ;;  %v4237_v48 = vrot.slane %v7530_v11, 5 }
 0x15e   : > { %v2299_v54 = vrot.slane %v2298_v22, 4  ;;  %v4236_v3 = vrot.slane %v4234_v9, 4  ;;  %v2327_v21 = vrot.slane %v2325_v50, 5  ;;  %v5090_v19 = vrot.slane %v6036_v17, 9 }
 0x15f   : > { %v2313_v61 = vrot.slane %v2312_v10, 4  ;;  %v4243_v53 = vrot.slane %v4241_v16, 4  ;;  %v4244_v56 = vrot.slane %v7548_v31, 5  ;;  %v2332_v14 = vrot.slane %v2330_v52, 4 }
 0x160   : > { %v2323_v57 = vrot.slane %v2322_v8, 4  ;;  %v2335_v28 = vrot.slane %v2333_v7, 5  ;;  %v2341_v36 = vrot.slane %v2339_v40, 5  ;;  %v2345_v45 = vrot.slane %v2343_v55, 4 }
 0x161   : > { %v2294_v42 = vsel %vm6150_vm4, %v2289_v24, %v7975_v2  ;;  %v2304_v11 = vsel %vm6150_vm4, %v2299_v54, %v2303_v1  ;;  %v4235_v25 = vsel %vm6416_vm7, %v5089_v37, %v4234_v9  ;;  %v4238_v44 = vsel %vm6416_vm7, %v4236_v3, %v4237_v48 }
 0x162   : > { %5440 = vmatmul.mubr.msk.bf16.gmra.mrb[20].mxu1 %vm660_vm3, %v4892_v15  ;;  %5576 = vmatmul.mubr.msk.bf16.gmra.mrb[20].mxu0 %vm660_vm3, %v5104_v33  ;;  %v2318_v31 = vsel %vm6150_vm4, %v2313_v61, %v7983_v47  ;;  %v4242_v38 = vsel %vm6416_vm7, %v5090_v19, %v4241_v16  ;;  %v4245_v0 = vsel %vm6416_vm7, %v4243_v53, %v4244_v56  ;;  %v2349_v23 = vshll.u32 %v6037_v59, 16 }
 0x163   : > { %5443 = vmatprep.mubr.msk.bf16.mxu1 %vm660_vm3, %v4893_v43  ;;  %5579 = vmatprep.mubr.msk.bf16.mxu0 %vm660_vm3, %v5105_v30  ;;  %v2328_v6 = vsel %vm6150_vm4, %v2323_v57, %v2327_v21  ;;  %v2336_v63 = vor.u32 %v2335_v28, %v2332_v14  ;;  %v2346_v62 = vor.u32 %v2345_v45, %v2341_v36  ;;  %v4248_v2 = vrot.slane %v6038_v27, 5 }
 0x164   : > { %v4894_v39 = vcombine.low %v2294_v42, %v2304_v11  ;;  %v5106_v15 = vcombine.low %v4235_v25, %v4238_v44  ;;  %v4895_v33 = vcombine.low %v2318_v31, %v2328_v6  ;;  %v5107_v58 = vcombine.low %v4242_v38, %v4245_v0 }
 0x165   : > { %v2351_v29 = vrot.slane %v2349_v23, 5  ;;  %v5091_v46 = vrot.slane %v6039_v26, 9  ;;  %v2337_v47 = vrot.slane %v2336_v63, 4  ;;  %v2347_v5 = vrot.slane %v2346_v62, 4 }
 0x166   : > { %v4250_v51 = vrot.slane %v4248_v2, 4  ;;  %v4251_v41 = vrot.slane %v7575_v20, 5 }
 0x167   : > { %v4249_v13 = vsel %vm6416_vm7, %v5091_v46, %v4248_v2  ;;  %v2342_v49 = vsel %vm6150_vm4, %v2337_v47, %v2341_v36  ;;  %v2352_v35 = vsel %vm6150_vm4, %v2347_v5, %v2351_v29 }
 0x168   : > { %v4252_v20 = vsel %vm6416_vm7, %v4250_v51, %v4251_v41  ;;  %v4896_v37 = vcombine.low %v2342_v49, %v2352_v35 }
 0x169   : > { %v5108_v4 = vcombine.low %v4249_v13, %v4252_v20 }
 0x16a   : > { %5444 = vmatmul.mubr.msk.bf16.gmra.mrb[24].mxu1 %vm660_vm3, %v4894_v39  ;;  %5580 = vmatmul.mubr.msk.bf16.gmra.mrb[24].mxu0 %vm660_vm3, %v5106_v15 }
 0x16b   : > { %5447 = vmatprep.mubr.msk.bf16.mxu1 %vm660_vm3, %v4895_v33  ;;  %5583 = vmatprep.mubr.msk.bf16.mxu0 %vm660_vm3, %v5107_v58 }
 0x172   : > { %5448 = vmatmul.mubr.msk.bf16.gmra.mrb[28].mxu1 %vm660_vm3, %v4896_v37  ;;  %5584 = vmatmul.mubr.msk.bf16.gmra.mrb[28].mxu0 %vm660_vm3, %v5108_v4 }
 0x1ed   : > { %v5387_v22 = vpop.f32.mrb[0].mxu1 }
 0x1ee   : > { %v1810_v34 = vpop.f32.mrb[1].mxu1 }
 0x1ef   : > { %v5388_v9 = vpop.f32.mrb[2].mxu1 }
 0x1f0   : > { %v1813_v18 = vpop.f32.mrb[3].mxu1 }
 0x1f5   : > { %v5391_v50 = vpop.f32.mrb[4].mxu1 }
 0x1f6   : > { %v1826_v30 = vpop.f32.mrb[5].mxu1 }
 0x1f7   : > { %v5392_v10 = vpop.f32.mrb[6].mxu1 }
 0x1f8   : > { %v1829_v60 = vpop.f32.mrb[7].mxu1 }
 0x1fd   : > { %v5395_v32 = vpop.f32.mrb[8].mxu1 }
 0x1fe   : > { %v1842_v16 = vpop.f32.mrb[9].mxu1 }
 0x1ff   : > { %v5396_v52 = vpop.f32.mrb[10].mxu1 }
 0x200   : > { %v1845_v12 = vpop.f32.mrb[11].mxu1 }
 0x205   : > { %v5399_v8 = vpop.f32.mrb[12].mxu1 }
 0x206   : > { %v1858_v7 = vpop.f32.mrb[13].mxu1 }
 0x207   : > { %v5400_v40 = vpop.f32.mrb[14].mxu1 }
 0x208   : > { %v1861_v55 = vpop.f32.mrb[15].mxu1 }
 0x20d   : > { %v5557_v43 = vpop.f32.mrb[0].mxu0 }
 0x20e   : > { %v5589_v24 = vadd.f32 %v5557_v43, %v5387_v22  ;;  %v4388_v1 = vpop.f32.mrb[1].mxu0 }
 0x20f   : > { %v5590_v48 = vadd.f32 %v4388_v1, %v1810_v34  ;;  %v5558_v54 = vpop.f32.mrb[2].mxu0 }
 0x210   : > { %4550 = vst.msk [vmem:[%s8059_s18 + $0x10] sm:$0xff] %vm4547_vm8, %v5589_v24  ;;  %v5591_v3 = vadd.f32 %v5558_v54, %v5388_v9  ;;  %v4391_v21 = vpop.f32.mrb[3].mxu0 }
 0x211   : > { %4548 = vst.msk [vmem:[%s8059_s18] sm:$0xff] %vm4547_vm8, %v5590_v48  ;;  %v5592_v17 = vadd.f32 %v4391_v21, %v1813_v18 }
 0x212   : > { %4551 = vst.msk [vmem:[%s8059_s18 + $0x18] sm:$0xff] %vm4547_vm8, %v5591_v3 }
 0x213   : > { %4549 = vst.msk [vmem:[%s8059_s18 + $0x8] sm:$0xff] %vm4547_vm8, %v5592_v17 }
 0x215   : > { %v5561_v19 = vpop.f32.mrb[4].mxu0 }
 0x216   : > { %v5593_v61 = vadd.f32 %v5561_v19, %v5391_v50  ;;  %v4404_v53 = vpop.f32.mrb[5].mxu0 }
 0x217   : > { %v5594_v56 = vadd.f32 %v4404_v53, %v1826_v30  ;;  %v5562_v14 = vpop.f32.mrb[6].mxu0 }
 0x218   : > { %4554 = vst.msk [vmem:[%s8059_s18 + $0x30] sm:$0xff] %vm4547_vm8, %v5593_v61  ;;  %v5595_v57 = vadd.f32 %v5562_v14, %v5392_v10  ;;  %v4407_v28 = vpop.f32.mrb[7].mxu0 }
 0x219   : > { %4552 = vst.msk [vmem:[%s8059_s18 + $0x20] sm:$0xff] %vm4547_vm8, %v5594_v56  ;;  %v5596_v36 = vadd.f32 %v4407_v28, %v1829_v60 }
 0x21a   : > { %4555 = vst.msk [vmem:[%s8059_s18 + $0x38] sm:$0xff] %vm4547_vm8, %v5595_v57 }
 0x21b   : > { %4553 = vst.msk [vmem:[%s8059_s18 + $0x28] sm:$0xff] %vm4547_vm8, %v5596_v36 }
 0x21d   : > { %v5565_v45 = vpop.f32.mrb[8].mxu0 }
 0x21e   : > { %v5597_v42 = vadd.f32 %v5565_v45, %v5395_v32  ;;  %v4420_v11 = vpop.f32.mrb[9].mxu0 }
 0x21f   : > { %v5598_v25 = vadd.f32 %v4420_v11, %v1842_v16  ;;  %v5566_v44 = vpop.f32.mrb[10].mxu0 }
 0x220   : > { %4558 = vst.msk [vmem:[%s8059_s18 + $0x50] sm:$0xff] %vm4547_vm8, %v5597_v42  ;;  %v5599_v31 = vadd.f32 %v5566_v44, %v5396_v52  ;;  %v4423_v38 = vpop.f32.mrb[11].mxu0 }
 0x221   : > { %4556 = vst.msk [vmem:[%s8059_s18 + $0x40] sm:$0xff] %vm4547_vm8, %v5598_v25  ;;  %v5600_v0 = vadd.f32 %v4423_v38, %v1845_v12 }
 0x222   : > { %4559 = vst.msk [vmem:[%s8059_s18 + $0x58] sm:$0xff] %vm4547_vm8, %v5599_v31 }
 0x223   : > { %4557 = vst.msk [vmem:[%s8059_s18 + $0x48] sm:$0xff] %vm4547_vm8, %v5600_v0 }
 0x225   : > { %v5569_v59 = vpop.f32.mrb[12].mxu0 }
 0x226   : > { %v5601_v23 = vadd.f32 %v5569_v59, %v5399_v8  ;;  %v4436_v6 = vpop.f32.mrb[13].mxu0 }
 0x227   : > { %v5602_v63 = vadd.f32 %v4436_v6, %v1858_v7  ;;  %v5570_v62 = vpop.f32.mrb[14].mxu0 }
 0x228   : > { %4562 = vst.msk [vmem:[%s8059_s18 + $0x70] sm:$0xff] %vm4547_vm8, %v5601_v23  ;;  %v5603_v27 = vadd.f32 %v5570_v62, %v5400_v40  ;;  %v4439_v2 = vpop.f32.mrb[15].mxu0 }
 0x229   : > { %4560 = vst.msk [vmem:[%s8059_s18 + $0x60] sm:$0xff] %vm4547_vm8, %v5602_v63  ;;  %v5604_v39 = vadd.f32 %v4439_v2, %v1861_v55 }
 0x22a   : > { %4563 = vst.msk [vmem:[%s8059_s18 + $0x78] sm:$0xff] %vm4547_vm8, %v5603_v27 }
 0x22b   : > { %4561 = vst.msk [vmem:[%s8059_s18 + $0x68] sm:$0xff] %vm4547_vm8, %v5604_v39 }
 0x22d   : > { %v5437_v15 = vpop.f32.mrb[16].mxu1  ;;  %v5573_v33 = vpop.f32.mrb[16].mxu0 }
 0x22e   : > { %v5605_v58 = vadd.f32 %v5573_v33, %v5437_v15  ;;  %v2552_v29 = vpop.f32.mrb[17].mxu1  ;;  %v4452_v26 = vpop.f32.mrb[17].mxu0 }
 0x22f   : > { %v5606_v46 = vadd.f32 %v4452_v26, %v2552_v29  ;;  %v5438_v47 = vpop.f32.mrb[18].mxu1  ;;  %v5574_v5 = vpop.f32.mrb[18].mxu0 }
 0x230   : > { %4566 = vst.msk [vmem:[%s8059_s18 + $0x90] sm:$0xff] %vm4547_vm8, %v5605_v58  ;;  %v5607_v51 = vadd.f32 %v5574_v5, %v5438_v47  ;;  %v2555_v41 = vpop.f32.mrb[19].mxu1  ;;  %v4455_v13 = vpop.f32.mrb[19].mxu0 }
 0x231   : > { %4564 = vst.msk [vmem:[%s8059_s18 + $0x80] sm:$0xff] %vm4547_vm8, %v5606_v46  ;;  %v5608_v49 = vadd.f32 %v4455_v13, %v2555_v41 }
 0x232   : > { %4567 = vst.msk [vmem:[%s8059_s18 + $0x98] sm:$0xff] %vm4547_vm8, %v5607_v51 }
 0x233   : > { %4565 = vst.msk [vmem:[%s8059_s18 + $0x88] sm:$0xff] %vm4547_vm8, %v5608_v49 }
 0x235   : > { %v5441_v35 = vpop.f32.mrb[20].mxu1  ;;  %v5577_v20 = vpop.f32.mrb[20].mxu0 }
 0x236   : > { %v5609_v37 = vadd.f32 %v5577_v20, %v5441_v35  ;;  %v2568_v4 = vpop.f32.mrb[21].mxu1  ;;  %v4468_v22 = vpop.f32.mrb[21].mxu0 }
 0x237   : > { %v5610_v34 = vadd.f32 %v4468_v22, %v2568_v4  ;;  %v5442_v9 = vpop.f32.mrb[22].mxu1  ;;  %v5578_v18 = vpop.f32.mrb[22].mxu0 }
 0x238   : > { %4570 = vst.msk [vmem:[%s8059_s18 + $0xb0] sm:$0xff] %vm4547_vm8, %v5609_v37  ;;  %v5611_v50 = vadd.f32 %v5578_v18, %v5442_v9  ;;  %v2571_v30 = vpop.f32.mrb[23].mxu1  ;;  %v4471_v10 = vpop.f32.mrb[23].mxu0 }
 0x239   : > { %4568 = vst.msk [vmem:[%s8059_s18 + $0xa0] sm:$0xff] %vm4547_vm8, %v5610_v34  ;;  %v5612_v60 = vadd.f32 %v4471_v10, %v2571_v30 }
 0x23a   : > { %4571 = vst.msk [vmem:[%s8059_s18 + $0xb8] sm:$0xff] %vm4547_vm8, %v5611_v50 }
 0x23b   : > { %4569 = vst.msk [vmem:[%s8059_s18 + $0xa8] sm:$0xff] %vm4547_vm8, %v5612_v60 }
 0x23d   : > { %v5445_v32 = vpop.f32.mrb[24].mxu1  ;;  %v5581_v16 = vpop.f32.mrb[24].mxu0 }
 0x23e   : > { %v5613_v52 = vadd.f32 %v5581_v16, %v5445_v32  ;;  %v2584_v12 = vpop.f32.mrb[25].mxu1  ;;  %v4484_v8 = vpop.f32.mrb[25].mxu0 }
 0x23f   : > { %v5614_v7 = vadd.f32 %v4484_v8, %v2584_v12  ;;  %v5446_v40 = vpop.f32.mrb[26].mxu1  ;;  %v5582_v55 = vpop.f32.mrb[26].mxu0 }
 0x240   : > { %4574 = vst.msk [vmem:[%s8059_s18 + $0xd0] sm:$0xff] %vm4547_vm8, %v5613_v52  ;;  %v5615_v43 = vadd.f32 %v5582_v55, %v5446_v40  ;;  %v2587_v24 = vpop.f32.mrb[27].mxu1  ;;  %v4487_v1 = vpop.f32.mrb[27].mxu0 }
 0x241   : > { %4572 = vst.msk [vmem:[%s8059_s18 + $0xc0] sm:$0xff] %vm4547_vm8, %v5614_v7  ;;  %v5616_v48 = vadd.f32 %v4487_v1, %v2587_v24 }
 0x242   : > { %4575 = vst.msk [vmem:[%s8059_s18 + $0xd8] sm:$0xff] %vm4547_vm8, %v5615_v43 }
 0x243   : > { %4573 = vst.msk [vmem:[%s8059_s18 + $0xc8] sm:$0xff] %vm4547_vm8, %v5616_v48 }
 0x245   : > { %v5449_v54 = vpop.f32.mrb[28].mxu1  ;;  %v5585_v3 = vpop.f32.mrb[28].mxu0 }
 0x246   : > { %v5617_v21 = vadd.f32 %v5585_v3, %v5449_v54  ;;  %v2600_v17 = vpop.f32.mrb[29].mxu1  ;;  %v4500_v19 = vpop.f32.mrb[29].mxu0 }
 0x247   : > { %v5618_v61 = vadd.f32 %v4500_v19, %v2600_v17  ;;  %v5450_v53 = vpop.f32.mrb[30].mxu1  ;;  %v5586_v56 = vpop.f32.mrb[30].mxu0 }
 0x248   : > { %4578 = vst.msk [vmem:[%s8059_s18 + $0xf0] sm:$0xff] %vm4547_vm8, %v5617_v21  ;;  %v5619_v14 = vadd.f32 %v5586_v56, %v5450_v53  ;;  %v2603_v57 = vpop.f32.mrb[31].mxu1  ;;  %v4503_v28 = vpop.f32.mrb[31].mxu0 }
 0x249   : > { %4576 = vst.msk [vmem:[%s8059_s18 + $0xe0] sm:$0xff] %vm4547_vm8, %v5618_v61  ;;  %v5620_v36 = vadd.f32 %v4503_v28, %v2603_v57 }
 0x24a   : > { %4579 = vst.msk [vmem:[%s8059_s18 + $0xf8] sm:$0xff] %vm4547_vm8, %v5619_v14 }
 0x24b   : > { %4577 = vst.msk [vmem:[%s8059_s18 + $0xe8] sm:$0xff] %vm4547_vm8, %v5620_v36 }
 0x24c PF: > { %s12_s11 = sadd.s32 1, %s6062_s11   ;;  %s8249_s9 = smov %s6058_s10 }
 0x24d   : > { %p9_p5 = scmp.ge.s32.totalorder %s12_s11, 4   ;;  %s8250_s10 = smov %s8252_s12 }
 0x24f   :  { %11 = sbr.rel (!%p9_p5) target bundleno = 2 (0x2), region = 69 }

</bundles_post_ra>
